<compile_context>
chip_gen: v5e
topology: v5e:2x2
jax: 0.10.0
libtpu: 0.0.40
codegen_flags: <defaults>
</compile_context>

<pallas_src>
import math

import jax
import jax.numpy as jnp
from jax.experimental import pallas as pl
from jax.experimental.pallas import tpu as pltpu


_LANE = 128
_VMEM_BUDGET = 20 * 1024 * 1024     # per-call working-set target
_VMEM_LIMIT = 32 * 1024 * 1024      # scoped VMEM limit requested (safe on v5e/v6e/v7x)


def _pad_to(n, m):
    return n + (-n) % m


def _tile_m_candidates(n_pad):
    """Largest-first row tiles dividing n_pad; prefer >= 2 M-tiles (v7x megacore)."""
    cands = [t for t in (1024, 512, 256, 128) if n_pad % t == 0 and 2 * t <= n_pad]
    if not cands:
        cands = [t for t in (1024, 512, 256, 128) if n_pad % t == 0] or [n_pad]
    return cands


# ------------------------- single-pass kernel (x resident) -------------------------

def _gcn_single_kernel(adj_ref, xm_ref, xr_ref, w_ref, b_ref, o_ref):
    # adj_ref: (tile_m, n_pad)  compute dtype, streams per M-tile
    # xm_ref:  (n_pad, f)       compute dtype, VMEM-resident matmul operand
    # xr_ref:  (tile_m, f)      residual rows (input precision)
    # w_ref:   (f, f) f32       VMEM-resident
    # b_ref:   (1, f) f32       VMEM-resident
    agg = jnp.dot(adj_ref[...], xm_ref[...], preferred_element_type=jnp.float32)
    out = jnp.dot(agg, w_ref[...], preferred_element_type=jnp.float32)
    out = out + b_ref[...] + xr_ref[...].astype(jnp.float32)
    o_ref[...] = jnp.tanh(out).astype(o_ref.dtype)


# --------------------- K-reduction kernel (very large graphs) ----------------------

def _gcn_reduce_kernel(adj_ref, xm_ref, xr_ref, w_ref, b_ref, o_ref, acc_ref):
    k = pl.program_id(1)
    part = jnp.dot(adj_ref[...], xm_ref[...], preferred_element_type=jnp.float32)

    @pl.when(k == 0)
    def _():
        acc_ref[...] = part          # assign on first step (saves the zero-init store)

    @pl.when(k != 0)
    def _():
        acc_ref[...] += part

    @pl.when(k == pl.num_programs(1) - 1)
    def _():
        out = jnp.dot(acc_ref[...], w_ref[...], preferred_element_type=jnp.float32)
        out = out + b_ref[...] + xr_ref[...].astype(jnp.float32)
        o_ref[...] = jnp.tanh(out).astype(o_ref.dtype)


# ----------------------------------- wrapper -----------------------------------

def gcn_forward(x, adj, weight, bias, *, compute_dtype=jnp.bfloat16, mode=None,
                tile_m=None, tile_k=None, vmem_budget_bytes=_VMEM_BUDGET):
    """y = tanh(adj @ (x @ W) + bias + x).

    x: (N, F), adj: (N, N), weight: (F, F), bias: (F,) -> (N, F).
    compute_dtype: dtype of adj and of the x matmul operand (f32 accumulation
    either way).  bf16 default halves the dominant N^2 HBM stream; use
    jnp.float32 for strict parity with the PyTorch path.
    mode / tile_m / tile_k are test/tuning overrides ("single" or "reduce").
    """
    n, f = x.shape
    assert adj.shape == (n, n)
    assert weight.shape == (f, f), "residual (x + ...) requires infeat == outfeat"
    out_dtype = x.dtype

    n_pad = _pad_to(n, _LANE)
    pad = n_pad - n
    if pad:
        x_p = jnp.pad(x, ((0, pad), (0, 0)))
        adj_p = jnp.pad(adj, ((0, pad), (0, pad)))
    else:
        x_p, adj_p = x, adj

    adj_c = adj_p.astype(compute_dtype)          # dominant stream
    x_mm = x_p.astype(compute_dtype)             # matmul operand for adj @ x
    x_res = x_p                                  # residual kept in input precision
    w = weight.astype(jnp.float32)
    b2 = bias.reshape(1, f).astype(jnp.float32)

    cd = jnp.dtype(compute_dtype).itemsize
    rb = jnp.dtype(x_res.dtype).itemsize
    ob = jnp.dtype(out_dtype).itemsize
    wmisc = 2 * f * f * 4 + 8 * f * 4            # resident W + bias (generous)

    def single_fp(tm):
        return 2 * tm * n_pad * cd + 2 * n_pad * f * cd + 2 * tm * f * (rb + ob) + wmisc

    def reduce_fp(tm, tk):
        return (2 * tm * tk * cd + 2 * tk * f * cd + 2 * tm * f * (rb + ob)
                + tm * f * 4 + wmisc)

    cands = _tile_m_candidates(n_pad)
    plan = None
    if mode != "reduce":
        if tile_m is not None:
            plan = ("single", int(tile_m), None)
        else:
            for tm in cands:
                if single_fp(tm) <= vmem_budget_bytes:
                    plan = ("single", tm, None)
                    break
            if plan is None and mode == "single":
                plan = ("single", cands[-1], None)
    if plan is None:
        tm_list = [int(tile_m)] if tile_m is not None else cands
        tk_list = [int(tile_k)] if tile_k is not None else [2048, 1024, 512, 256, 128]
        for tm in tm_list:
            for tk in tk_list:
                if n_pad % tk:
                    continue
                if tile_k is not None or reduce_fp(tm, tk) <= vmem_budget_bytes:
                    plan = ("reduce", tm, tk)
                    break
            if plan is not None:
                break
        if plan is None:
            plan = ("reduce", cands[-1], _LANE)

    plan_mode, tile_m, tile_k = plan
    assert n_pad % tile_m == 0
    assert tile_k is None or n_pad % tile_k == 0

    grid_m = n_pad // tile_m
    vmem_limit = max(_VMEM_LIMIT, int(vmem_budget_bytes) + (8 << 20))

    if plan_mode == "single":
        y_pad = pl.pallas_call(
            _gcn_single_kernel,
            out_shape=jax.ShapeDtypeStruct((n_pad, f), out_dtype),
            grid=(grid_m,),
            in_specs=[
                pl.BlockSpec((tile_m, n_pad), lambda i: (i, 0)),   # adj row-slab (streams)
                pl.BlockSpec((n_pad, f), lambda i: (0, 0)),        # x matmul operand (resident)
                pl.BlockSpec((tile_m, f), lambda i: (i, 0)),       # x residual rows
                pl.BlockSpec((f, f), lambda i: (0, 0)),            # W (resident)
                pl.BlockSpec((1, f), lambda i: (0, 0)),            # bias (resident)
            ],
            out_specs=pl.BlockSpec((tile_m, f), lambda i: (i, 0)),
            compiler_params=pltpu.CompilerParams(
                dimension_semantics=("parallel",),
                vmem_limit_bytes=vmem_limit),
            cost_estimate=pl.CostEstimate(
                flops=2 * n_pad * n_pad * f + 2 * n_pad * f * f,
                transcendentals=n_pad * f,
                bytes_accessed=(n_pad * n_pad * cd + n_pad * f * (cd + rb + ob)
                                + f * f * 4 + f * 4)),
        )(adj_c, x_mm, x_res, w, b2)
    else:
        grid_k = n_pad // tile_k
        y_pad = pl.pallas_call(
            _gcn_reduce_kernel,
            out_shape=jax.ShapeDtypeStruct((n_pad, f), out_dtype),
            grid=(grid_m, grid_k),
            in_specs=[
                pl.BlockSpec((tile_m, tile_k), lambda i, k: (i, k)),  # adj tile (streams)
                pl.BlockSpec((tile_k, f), lambda i, k: (k, 0)),       # x K-slab
                pl.BlockSpec((tile_m, f), lambda i, k: (i, 0)),       # x residual rows
                pl.BlockSpec((f, f), lambda i, k: (0, 0)),            # W (resident)
                pl.BlockSpec((1, f), lambda i, k: (0, 0)),            # bias (resident)
            ],
            out_specs=pl.BlockSpec((tile_m, f), lambda i, k: (i, 0)),
            scratch_shapes=[pltpu.VMEM((tile_m, f), jnp.float32)],    # f32 accumulator
            compiler_params=pltpu.CompilerParams(
                dimension_semantics=("parallel", "arbitrary"),
                vmem_limit_bytes=vmem_limit),
            cost_estimate=pl.CostEstimate(
                flops=2 * n_pad * n_pad * f + 2 * n_pad * f * f,
                transcendentals=n_pad * f,
                bytes_accessed=(n_pad * n_pad * cd + grid_m * n_pad * f * cd
                                + n_pad * f * (rb + ob) + f * f * 4 + f * 4)),
        )(adj_c, x_mm, x_res, w, b2)

    return y_pad[:n] if pad else y_pad


def gcn_reference(x, adj, weight, bias):
    support = jnp.dot(x, weight, precision=jax.lax.Precision.HIGHEST)
    out = jnp.dot(adj, support, precision=jax.lax.Precision.HIGHEST) + bias
    return jnp.tanh(out + x)


def _make_inputs(key, n, f):
    k_x, k_adj, k_w, k_b = jax.random.split(key, 4)
    x = jax.random.normal(k_x, (n, f), dtype=jnp.float32)
    # Row-normalized dense adjacency (torch.spmm treated as dense here).
    adj_raw = (jax.random.uniform(k_adj, (n, n)) > 0.5).astype(jnp.float32)
    adj_raw = adj_raw + jnp.eye(n, dtype=jnp.float32)
    adj = adj_raw / jnp.sum(adj_raw, axis=-1, keepdims=True)
    # Parameter init matching reset_parameters: U(-stdv, stdv), stdv = 1/sqrt(outfeat)
    stdv = 1.0 / math.sqrt(f)
    weight = jax.random.uniform(k_w, (f, f), minval=-stdv, maxval=stdv, dtype=jnp.float32)
    bias = jax.random.uniform(k_b, (f,), minval=-stdv, maxval=stdv, dtype=jnp.float32)
    return x, adj, weight, bias


if __name__ == "__main__":
    key = jax.random.PRNGKey(0)
    N, F = 512, 128   # graph nodes, feature dim (infeat == outfeat for the residual)

    x, adj, weight, bias = _make_inputs(key, N, F)
    y_ref = gcn_reference(x, adj, weight, bias)

    # 1) Strict-precision path (f32 operands), fused single-pass kernel.
    y_f32 = gcn_forward(x, adj, weight, bias, compute_dtype=jnp.float32)
    jax.block_until_ready(y_f32)
    assert y_f32.shape == (N, F)
    assert jnp.allclose(y_f32, y_ref, atol=1e-3, rtol=1e-3), "f32 single-pass mismatch"

    # 2) Default fast path: bf16 adjacency / operands, f32 accumulation.
    y_bf16 = gcn_forward(x, adj, weight, bias)
    jax.block_until_ready(y_bf16)
    assert jnp.allclose(y_bf16, y_ref, atol=2e-2, rtol=2e-2), "bf16 single-pass mismatch"

    # 3) K-reduction (large-graph) path, forced small tiles to exercise the
    #    accumulator; f32 operands for a tight check.
    y_red = gcn_forward(x, adj, weight, bias, compute_dtype=jnp.float32,
                        mode="reduce", tile_m=128, tile_k=128)
    jax.block_until_ready(y_red)
    assert jnp.allclose(y_red, y_ref, atol=1e-3, rtol=1e-3), "reduce-path mismatch"

    # 4) Non-multiple-of-128 N exercises the zero-padding path.
    x2, adj2, w2, b2 = _make_inputs(jax.random.PRNGKey(1), 300, 64)
    y2 = gcn_forward(x2, adj2, w2, b2)
    jax.block_until_ready(y2)
    y2_ref = gcn_reference(x2, adj2, w2, b2)
    assert y2.shape == (300, 64)
    assert jnp.allclose(y2, y2_ref, atol=2e-2, rtol=2e-2), "padded-path mismatch"

    print("KERNEL_OK")
</pallas_src>

<mosaic_0001>
module attributes {stable_mosaic.version = 11 : i64} {
  func.func @_gcn_single_kernel(%arg0: i32, %arg1: memref<256x512xf32, #tpu.memory_space<vmem>>, %arg2: memref<512x128xf32, #tpu.memory_space<vmem>>, %arg3: memref<256x128xf32, #tpu.memory_space<vmem>>, %arg4: memref<128x128xf32, #tpu.memory_space<vmem>>, %arg5: memref<1x128xf32, #tpu.memory_space<vmem>>, %arg6: memref<256x128xf32, #tpu.memory_space<vmem>>) attributes {dimension_semantics = [#tpu.dimension_semantics<parallel>], iteration_bounds = array<i64: 2>, scalar_prefetch = 0 : i64, scratch_operands = 0 : i64, tpu.core_type = #tpu.core_type<tc>, window_params = [{transform_indices = @transform_0, window_bounds = array<i64: 256, 512>}, {pipeline_mode = #tpu.pipeline_mode<synchronous>, transform_indices = @transform_1, window_bounds = array<i64: 512, 128>}, {transform_indices = @transform_2, window_bounds = array<i64: 256, 128>}, {pipeline_mode = #tpu.pipeline_mode<synchronous>, transform_indices = @transform_3, window_bounds = array<i64: 128, 128>}, {pipeline_mode = #tpu.pipeline_mode<synchronous>, transform_indices = @transform_4, window_bounds = array<i64: 1, 128>}, {transform_indices = @transform_5, window_bounds = array<i64: 256, 128>}]} {
    %c0 = arith.constant 0 : index
    %c0_0 = arith.constant 0 : index
    %0 = vector.load %arg1[%c0, %c0_0] : memref<256x512xf32, #tpu.memory_space<vmem>>, vector<256x512xf32>
    %c0_1 = arith.constant 0 : index
    %c0_2 = arith.constant 0 : index
    %1 = vector.load %arg2[%c0_1, %c0_2] : memref<512x128xf32, #tpu.memory_space<vmem>>, vector<512x128xf32>
    %cst = arith.constant dense<0.000000e+00> : vector<256x128xf32>
    %2 = tpu.matmul %0, %1, %cst {dimension_numbers = #tpu.dot_dimension_numbers<[1], [0], [0], [1], [0, 0, 1, 1], [], []>} : vector<256x512xf32>, vector<512x128xf32>, vector<256x128xf32> -> vector<256x128xf32>
    %c0_3 = arith.constant 0 : index
    %c0_4 = arith.constant 0 : index
    %3 = vector.load %arg4[%c0_3, %c0_4] : memref<128x128xf32, #tpu.memory_space<vmem>>, vector<128x128xf32>
    %cst_5 = arith.constant dense<0.000000e+00> : vector<256x128xf32>
    %4 = tpu.matmul %2, %3, %cst_5 {dimension_numbers = #tpu.dot_dimension_numbers<[1], [0], [0], [1], [0, 0, 1, 1], [], []>} : vector<256x128xf32>, vector<128x128xf32>, vector<256x128xf32> -> vector<256x128xf32>
    %c0_6 = arith.constant 0 : index
    %c0_7 = arith.constant 0 : index
    %5 = vector.load %arg5[%c0_6, %c0_7] : memref<1x128xf32, #tpu.memory_space<vmem>>, vector<1x128xf32>
    %6 = vector.broadcast %5 : vector<1x128xf32> to vector<256x128xf32>
    %7 = arith.addf %4, %6 : vector<256x128xf32>
    %c0_8 = arith.constant 0 : index
    %c0_9 = arith.constant 0 : index
    %8 = vector.load %arg3[%c0_8, %c0_9] : memref<256x128xf32, #tpu.memory_space<vmem>>, vector<256x128xf32>
    %9 = arith.addf %7, %8 : vector<256x128xf32>
    %10 = math.tanh %9 : vector<256x128xf32>
    %c0_10 = arith.constant 0 : index
    %c0_11 = arith.constant 0 : index
    %11 = vector.load %arg6[%c0_10, %c0_11] : memref<256x128xf32, #tpu.memory_space<vmem>>, vector<256x128xf32>
    tpu.vector_store %arg6[%c0_10, %c0_11], %10 {strides = array<i32>} : memref<256x128xf32, #tpu.memory_space<vmem>>, vector<256x128xf32>,
    return
  }
  func.func @transform_0(%arg0: i32) -> (i32, i32) {
    %c0_i32 = arith.constant 0 : i32
    %c0_i32_0 = arith.constant 0 : i32
    return %arg0, %c0_i32 : i32, i32
  }
  func.func @transform_1(%arg0: i32) -> (i32, i32) {
    %c0_i32 = arith.constant 0 : i32
    %c0_i32_0 = arith.constant 0 : i32
    %c0_i32_1 = arith.constant 0 : i32
    return %c0_i32, %c0_i32_0 : i32, i32
  }
  func.func @transform_2(%arg0: i32) -> (i32, i32) {
    %c0_i32 = arith.constant 0 : i32
    %c0_i32_0 = arith.constant 0 : i32
    return %arg0, %c0_i32 : i32, i32
  }
  func.func @transform_3(%arg0: i32) -> (i32, i32) {
    %c0_i32 = arith.constant 0 : i32
    %c0_i32_0 = arith.constant 0 : i32
    %c0_i32_1 = arith.constant 0 : i32
    return %c0_i32, %c0_i32_0 : i32, i32
  }
  func.func @transform_4(%arg0: i32) -> (i32, i32) {
    %c0_i32 = arith.constant 0 : i32
    %c0_i32_0 = arith.constant 0 : i32
    %c0_i32_1 = arith.constant 0 : i32
    return %c0_i32, %c0_i32_0 : i32, i32
  }
  func.func @transform_5(%arg0: i32) -> (i32, i32) {
    %c0_i32 = arith.constant 0 : i32
    %c0_i32_0 = arith.constant 0 : i32
    return %arg0, %c0_i32 : i32, i32
  }
}

</mosaic_0001>

<bundles_post_ra>
// kernel: tpu_custom_call.1
= control target key start
LH: loop header
LB: loop body
LE: loop exit
PB: predicated region body
PF: predicated region fallthrough
CT: control target
= control target key end

     0   :  { %s2314_s0 = inlined_call_operand.hbm [shape: f32[512,512], index: 0, kind: input, shape index: {}]   ;;  %s2315_s1 = inlined_call_operand.hbm [shape: f32[512,128], index: 1, kind: input, shape index: {}]   ;;  %s2316_s2 = inlined_call_operand.hbm [shape: f32[512,128], index: 2, kind: input, shape index: {}]   ;;  %s2317_s3 = inlined_call_operand.hbm [shape: f32[128,128], index: 3, kind: input, shape index: {}]   ;;  %s2318_s4 = inlined_call_operand.vmem [shape: f32[1,128], index: 4, kind: input, shape index: {}]   ;;  %s2319_s5 = inlined_call_operand.hbm [shape: f32[512,128], index: 5, kind: output, shape index: {}]  }
   0x1   :  { %2330 = sst [smem:[#allocation20_spill]] %s2314_s0 }
   0x2   :  { %2331 = sst [smem:[#allocation21_spill]] %s2315_s1 }
   0x3   :  { %10 = vsyncpa [#allocation3], 0 }
   0x4   :  { %12 = vsyncpa [#allocation3 + $0x1], 0 }
   0x5   :  { %13 = vsyncpa [#allocation6], 0 }
   0x6   :  { %14 = vsyncpa [#allocation4], 0 }
   0x7   :  { %16 = vsyncpa [#allocation4 + $0x1], 0  ;;  %s1810_s18 = smov 0   ;;  %s1812_s19 = smov 0  }
   0x8   :  { %s1814_s20 = smov 0   ;;  %s1816_s21 = smov 0  }
   0x9 LB: > { %2332 = sst [smem:[#allocation15_spill]] %s1758_s18  ;;  %s1831_s22 = sadd.s32 4294967295, %s1770_s21   ;;  %s1770_s21 = sphi %s1816_s21, %s2354_s21   ;;  %s1766_s20 = sphi %s1814_s20, %s2356_s20   ;;  %s1762_s19 = sphi %s1812_s19, %s2358_s19   ;;  %s1758_s18 = sphi %s1810_s18, %s2357_s18  }
   0xa   : > { %2333 = sst [smem:[#allocation16_spill]] %s1766_s20  ;;  %s1354_s23 = sadd.s32 4294967294, %s1770_s21  }
   0xb   : > { %p42_p0 = scmp.ne.s32.totalorder %s1762_s19, %s1758_s18  ;;  %p2324_p1 = scmp.eq.s32.totalorder %s1831_s22, 0 }
   0xc   : > { %p155_p2 = scmp.eq.s32.totalorder %s1831_s22, 1  ;;  %p161_p3 = scmp.eq.s32.totalorder %s1354_s23, 1 }
   0xd   : > { %p1840_p4 = por %p2324_p1, %p42_p0  ;;  %p1355_p5 = scmp.ge.s32.totalorder %s1770_s21, 1 }
   0xe   : > { %p1845_p6 = por %p161_p3, %p42_p0  ;;  %p168_p7 = scmp.lt.s32.totalorder %s1770_s21, 3 }
   0xf   : > { %s2337_s1 = sld [smem:[#allocation21_spill]]  ;;  %s1772_s30 = smov [#allocation5]  }
  0x10   : > { %s2335_s25 = scalar_select %p1845_p6, 1, 0 }
  0x11   : > { %p1853_p8 = pnand %p1355_p5, %p168_p7  ;;  %s181_s6 = sshll.u32 %s1772_s30, 4  ;;  %s182_s6 = int_to_ptr.vmem [resolvable:$true] %s181_s6 }
  0x12   : > { %2336 = sst [smem:[#allocation17_spill]] %s2335_s25  ;;  %s1867_s8 = sadd.s32 1, %s1770_s21  }
  0x13   : > { %p1443_p9 = pneg %p1853_p8  ;;  %2340 = sst [smem:[#allocation18_spill]] %s1867_s8 }
  0x14   : > { %s2320_s9 = smov 128   ;;  %s2322_s10 = smov 8  }
  0x15   : > { %s179_s28 = sshll.u32 %s2337_s1, 4  ;;  %p1861_p10 = pnand %p1443_p9, %p2324_p1  ;;  %s180_s28 = int_to_ptr.hbm [resolvable:$true] %s179_s28 }
  0x16   : > { %s26_s11 = ssub.s32 %s1770_s21, %s1867_s8  ;;  %s29_s12 = sadd.s32 1, %s1766_s20 }
  0x17   : > { %1446 = dma.hbm_to_vmem [thread:$0]  (!%p1861_p10), %s180_s28, 8192, %s182_s6, [#allocation6], %s2320_s9, %s2320_s9, %s2322_s10  }
  0x18   : > { %p27_p12 = scmp.eq.s32.totalorder %s26_s11, 0  ;;  %p36_p13 = scmp.ne.s32.totalorder %s1766_s20, %s1762_s19 }
  0x19   : > { %p37_p0 = scmp.eq.s32.totalorder %s1770_s21, 0  ;;  %p1463_p3 = scmp.lt.s32.totalorder %s1770_s21, 2 }
  0x1a   : > { %s1882_s13 = scalar_select %p27_p12, %s1766_s20, %s29_s12  }
  0x1b   : > { %p38_p5 = por %p37_p0, %p36_p13  ;;  %p1886_p7 = por %p155_p2, %p36_p13 }
  0x1c   : > { %2341 = sst [smem:[#allocation19_spill]] %s1882_s13  ;;  %s212_s15 = sand.u32 1, %s1770_s21  }
  0x1d   : > { %s214_s16 = sand.u32 1, %s1766_s20   ;;  %s1378_s23 = sshll.u32 %s1770_s21, 10 }
  0x1e   : > { %s1359_s17 = sshll.u32 %s214_s16, 10  ;;  %s2343_s0 = sld [smem:[#allocation20_spill]] }
  0x1f   : > { %s216_s30 = scalar_lea.vmem [#allocation2], %s1359_s17  ;;  %p1898_p9 = pnand %p1463_p3, %p38_p5 }
  0x20   : > { %s225_s6 = sshll.u32 %s216_s30, 4  ;;  %s1363_s9 = sshll.u32 %s214_s16, 8  ;;  %s226_s6 = int_to_ptr.vmem [resolvable:$true] %s225_s6 }
  0x21   : > { %s1902_s10 = scalar_lea.sflag [#allocation3], %s212_s15  ;;  %p1606_p12 = pneg %p1898_p9 }
  0x24   : > { %s222_s28 = scalar_lea.hbm %s2343_s0, %s1378_s23  ;;  %s1609_s26 = scalar_lea.hbm %s2343_s0, 2048 }
  0x25   : > { %s223_s11 = sshll.u32 %s222_s28, 4  ;;  %s224_s11 = int_to_ptr.hbm [resolvable:$true] %s223_s11 }
  0x26   : > { %s1602_s1 = sshra.s32 %s224_s11, 4  ;;  %s1603_s1 = int_to_ptr.hbm [resolvable:$true] %s1602_s1 }
  0x27   : > { %s1604_s13 = scalar_lea.hbm %s1603_s1, 1024  ;;  %p1610_p3 = scmp.lt.s32.totalorder %s1603_s1, %s2343_s0 }
  0x28   : > { %p1605_p2 = scmp.ne.s32.totalorder %s1603_s1, %s1604_s13  ;;  %p1611_p5 = scmp.lt.s32.totalorder %s1609_s26, %s1604_s13 }
  0x2a   : > { %p1607_p13 = pnand %p1606_p12, %p1605_p2  ;;  %p1612_p11 = por %p1611_p5, %p1610_p3 }
  0x2c   : > { %p1608_p0 = pneg %p1607_p13 }
  0x2e   : > { %p1613_p1 = pnand %p1612_p11, %p1608_p0 }
  0x30   : > { %1616 = shalt.err (!%p1613_p1)
}
  0x31   : > { %s1775_s15 = smov 512   ;;  %s1776_s16 = smov 32  }
  0x32   : > { %1453 = dma.hbm_to_vmem [thread:$0]  (!%p1898_p9), %s224_s11, 16384, %s226_s6, %s1902_s10, %s1775_s15, %s1775_s15, %s1776_s16  }
  0x33   : > { %s193_s17 = sshll.u32 %s2317_s3, 4  ;;  %s239_s23 = scalar_lea.vmem [#allocation7], %s1363_s9  ;;  %s194_s17 = int_to_ptr.hbm [resolvable:$true] %s193_s17 }
  0x34   : > { %s247_s27 = sshll.u32 %s239_s23, 4  ;;  %s1379_s1 = sshll.u32 %s1770_s21, 8  ;;  %s248_s27 = int_to_ptr.vmem [resolvable:$true] %s247_s27 }
  0x35   : > { %s1777_s13 = smov [#allocation8]   ;;  %s244_s8 = scalar_lea.hbm %s2316_s2, %s1379_s1 }
  0x36   : > { %s195_s26 = sshll.u32 %s1777_s13, 4  ;;  %s245_s25 = sshll.u32 %s244_s8, 4  ;;  %s196_s26 = int_to_ptr.vmem [resolvable:$true] %s195_s26  ;;  %s246_s25 = int_to_ptr.hbm [resolvable:$true] %s245_s25 }
  0x37   : > { %s2345_s18 = smov 8   ;;  %s2346_s6 = smov 128  }
  0x38   : > { %1449 = dma.hbm_to_vmem [thread:$0]  (!%p1861_p10), %s194_s17, 2048, %s196_s26, [#allocation6], %s2346_s6, %s2346_s6, %s2345_s18  }
  0x39   : > { %s1662_s20 = sshra.s32 %s246_s25, 4  ;;  %s1669_s15 = scalar_lea.hbm %s2316_s2, 512  ;;  %s1663_s20 = int_to_ptr.hbm [resolvable:$true] %s1662_s20 }
  0x3a   : > { %s1664_s9 = scalar_lea.hbm %s1663_s20, 256  ;;  %p1670_p13 = scmp.lt.s32.totalorder %s1663_s20, %s2316_s2 }
  0x3b   : > { %p1665_p1 = scmp.ne.s32.totalorder %s1663_s20, %s1664_s9  ;;  %p1671_p0 = scmp.lt.s32.totalorder %s1669_s15, %s1664_s9 }
  0x3d   : > { %p1667_p11 = pnand %p1665_p1, %p1606_p12  ;;  %p1672_p10 = por %p1671_p0, %p1670_p13 }
  0x3f   : > { %p1668_p2 = pneg %p1667_p11 }
  0x41   : > { %p1673_p3 = pnand %p1672_p10, %p1668_p2 }
  0x43   : > { %1676 = shalt.err (!%p1673_p3)
}
  0x44   : > { %1456 = dma.hbm_to_vmem [thread:$0]  (!%p1898_p9), %s246_s25, 4096, %s248_s27, %s1902_s10, %s2346_s6, %s2346_s6, %s2345_s18  }
  0x45   : > { %259 = sbr.rel (%p1853_p8) target bundleno = 706 (0x2c2), region = 40  ;;  %s261_s16 = sand.u32 (!%p1853_p8), 1, %s1831_s22  }
  0x46   : > { %s1949_s30 = sand.u32 (!%p1853_p8), 1, %s1762_s19   ;;  %s262_s23 = scalar_lea.sflag (!%p1853_p8), [#allocation3], %s261_s16 }
  0x47   : > { %s1367_s17 = sshll.u32 (!%p1853_p8), %s1949_s30, 10 }
  0x48   : > { %s1952_s1 = scalar_lea.vmem (!%p1853_p8), [#allocation2], %s1367_s17 }
  0x4a   : > { %1737 = dma.done.wait (%p1840_p4), %s262_s23, 16384  }
  0x4b   : > { %1739 = vsyncadd (%p1840_p4), %s262_s23, 4294950912  ;;  %p2347_p9 = scmp.eq.s32.totalorder %s1831_s22, 0 }
  0x4d   : > { %1741 = dma.done.wait (%p2347_p9), [#allocation6], 8192   ;;  %p2348_p8 = pmov %p2347_p9 }
  0x4e   : > { %s1369_s18 = sshll.u32 %s1949_s30, 8 }
  0x4f   : > { %1743 = vsyncadd (%p2348_p8), [#allocation6], 4294959104  ;;  %s1965_s25 = scalar_lea.vmem [#allocation7], %s1369_s18 }
  0x50   : > { %1745 = dma.done.wait (%p1840_p4), %s262_s23, 4096  }
  0x51   : > { %1747 = vsyncadd (%p1840_p4), %s262_s23, 4294963200  ;;  %p2349_p12 = pmov %p2348_p8 }
  0x52   : > { %p2350_p5 = pmov %p2348_p8 }
  0x53   : > { %1749 = dma.done.wait (%p2349_p12), [#allocation6], 2048  }
  0x54   : > { %1751 = vsyncadd (%p2350_p5), [#allocation6], 4294965248  ;;  %v464_v0 = vld [vmem:[#allocation5 + $0x78] sm:$0xff]  ;;  %v463_v1 = vld [vmem:[#allocation5 + $0x70] sm:$0xff]  ;;  %s2172_s10 = scalar_lea.vmem [#allocation9], %s1369_s18  ;;  %s1380_s12 = sshll.u32 %s1831_s22, 8 }
  0x55   : > { %1381 = vmatpush.msra.mxu1 %v464_v0  ;;  %1382 = vmatpush.msra.mxu2 %v464_v0  ;;  %v462_v2 = vld [vmem:[#allocation5 + $0x68] sm:$0xff]  ;;  %v461_v3 = vld [vmem:[#allocation5 + $0x60] sm:$0xff]  ;;  %v460_v4 = vld [vmem:[#allocation5 + $0x58] sm:$0xff]  ;;  %s1238_s26 = scalar_lea.hbm %s2319_s5, %s1380_s12  ;;  %s1239_s28 = sshll.u32 %s2172_s10, 4  ;;  %s1240_s28 = int_to_ptr.vmem [resolvable:$true] %s1239_s28 }
  0x56   : > { %1383 = vmatpush.msra.mxu3 %v464_v0  ;;  %513 = vmatpush.msra.mxu0 %v464_v0  ;;  %v459_v5 = vld [vmem:[#allocation5 + $0x50] sm:$0xff]  ;;  %v458_v6 = vld [vmem:[#allocation5 + $0x48] sm:$0xff]  ;;  %v457_v7 = vld [vmem:[#allocation5 + $0x40] sm:$0xff]  ;;  %s1241_s6 = sshll.u32 %s1238_s26, 4  ;;  %s1227_s20 = scalar_lea.sflag [#allocation4], %s1949_s30  ;;  %s1242_s6 = int_to_ptr.hbm [resolvable:$true] %s1241_s6 }
  0x57   : > { %1384 = vmatpush.msra.mxu1 %v463_v1  ;;  %1385 = vmatpush.msra.mxu2 %v463_v1  ;;  %v456_v8 = vld [vmem:[#allocation5 + $0x38] sm:$0xff]  ;;  %v455_v9 = vld [vmem:[#allocation5 + $0x30] sm:$0xff]  ;;  %v454_v10 = vld [vmem:[#allocation5 + $0x28] sm:$0xff]  ;;  %s1706_s9 = sshra.s32 %s1242_s6, 4  ;;  %s1712_s15 = scalar_lea.hbm %s2319_s5, 512  ;;  %s1707_s9 = int_to_ptr.hbm [resolvable:$true] %s1706_s9 }
  0x58   : > { %1386 = vmatpush.msra.mxu3 %v463_v1  ;;  %514 = vmatpush.msra.mxu0 %v463_v1  ;;  %v453_v11 = vld [vmem:[#allocation5 + $0x20] sm:$0xff]  ;;  %v452_v12 = vld [vmem:[#allocation5 + $0x18] sm:$0xff]  ;;  %v451_v13 = vld [vmem:[#allocation5 + $0x10] sm:$0xff]  ;;  %s1708_s22 = scalar_lea.hbm %s1707_s9, 256  ;;  %p1713_p2 = scmp.lt.s32.totalorder %s1707_s9, %s2319_s5 }
  0x59   : > { %1387 = vmatpush.msra.mxu1 %v462_v2  ;;  %1388 = vmatpush.msra.mxu2 %v462_v2  ;;  %v450_v14 = vld [vmem:[#allocation5 + $0x8] sm:$0xff]  ;;  %v449_v15 = vld [vmem:[#allocation5] sm:$0xff]  ;;  %v496_v18 = vld [vmem:[#allocation5 + $0x178] sm:$0xff]  ;;  %p1709_p4 = scmp.ne.s32.totalorder %s1707_s9, %s1708_s22  ;;  %p1714_p13 = scmp.lt.s32.totalorder %s1712_s15, %s1708_s22 }
  0x5a   : > { %1389 = vmatpush.msra.mxu3 %v462_v2  ;;  %515 = vmatpush.msra.mxu0 %v462_v2  ;;  %v353_v16 = vld [vmem:[%s1952_s1 + $0x100] sm:$0xff]  ;;  %v480_v20 = vld [vmem:[#allocation5 + $0xf8] sm:$0xff]  ;;  %v495_v22 = vld [vmem:[#allocation5 + $0x170] sm:$0xff] }
  0x5b   : > { %1390 = vmatpush.msra.mxu1 %v461_v3  ;;  %1391 = vmatpush.msra.mxu2 %v461_v3  ;;  %v385_v17 = vld [vmem:[%s1952_s1 + $0x200] sm:$0xff]  ;;  %v512_v21 = vld [vmem:[#allocation5 + $0x1f8] sm:$0xff]  ;;  %v479_v23 = vld [vmem:[#allocation5 + $0xf0] sm:$0xff]  ;;  %p1710_p1 = pnand %p1709_p4, %p1886_p7  ;;  %p1715_p0 = por %p1714_p13, %p1713_p2 }
  0x5c   : > { %1392 = vmatpush.msra.mxu3 %v461_v3  ;;  %516 = vmatpush.msra.mxu0 %v461_v3  ;;  %v417_v19 = vld [vmem:[%s1952_s1 + $0x300] sm:$0xff]  ;;  %v511_v24 = vld [vmem:[#allocation5 + $0x1f0] sm:$0xff]  ;;  %v494_v25 = vld [vmem:[#allocation5 + $0x168] sm:$0xff] }
  0x5d   : > { %1393 = vmatpush.msra.mxu1 %v460_v4  ;;  %1394 = vmatpush.msra.mxu2 %v460_v4  ;;  %v478_v26 = vld [vmem:[#allocation5 + $0xe8] sm:$0xff]  ;;  %v493_v28 = vld [vmem:[#allocation5 + $0x160] sm:$0xff]  ;;  %v492_v34 = vld [vmem:[#allocation5 + $0x158] sm:$0xff]  ;;  %p1711_p11 = pneg %p1710_p1 }
  0x5e   : > { %1395 = vmatpush.msra.mxu3 %v460_v4  ;;  %517 = vmatpush.msra.mxu0 %v460_v4  ;;  %v510_v27 = vld [vmem:[#allocation5 + $0x1e8] sm:$0xff]  ;;  %v357_v29 = vld [vmem:[%s1952_s1 + $0x120] sm:$0xff]  ;;  %v508_v35 = vld [vmem:[#allocation5 + $0x1d8] sm:$0xff] }
  0x5f   : > { %1396 = vmatpush.msra.mxu1 %v459_v5  ;;  %1397 = vmatpush.msra.mxu2 %v459_v5  ;;  %v389_v30 = vld [vmem:[%s1952_s1 + $0x220] sm:$0xff]  ;;  %v476_v36 = vld [vmem:[#allocation5 + $0xd8] sm:$0xff]  ;;  %v491_v37 = vld [vmem:[#allocation5 + $0x150] sm:$0xff]  ;;  %p1716_p10 = pnand %p1715_p0, %p1711_p11 }
  0x60   : > { %1398 = vmatpush.msra.mxu3 %v459_v5  ;;  %518 = vmatpush.msra.mxu0 %v459_v5  ;;  %v509_v31 = vld [vmem:[#allocation5 + $0x1e0] sm:$0xff]  ;;  %v507_v38 = vld [vmem:[#allocation5 + $0x1d0] sm:$0xff]  ;;  %v490_v40 = vld [vmem:[#allocation5 + $0x148] sm:$0xff] }
  0x61   : > { %1399 = vmatpush.msra.mxu1 %v458_v6  ;;  %1400 = vmatpush.msra.mxu2 %v458_v6  ;;  %v477_v32 = vld [vmem:[#allocation5 + $0xe0] sm:$0xff]  ;;  %v475_v39 = vld [vmem:[#allocation5 + $0xd0] sm:$0xff]  ;;  %v506_v41 = vld [vmem:[#allocation5 + $0x1c8] sm:$0xff] }
  0x62   : > { %1401 = vmatpush.msra.mxu3 %v458_v6  ;;  %519 = vmatpush.msra.mxu0 %v458_v6  ;;  %v421_v33 = vld [vmem:[%s1952_s1 + $0x320] sm:$0xff]  ;;  %v474_v42 = vld [vmem:[#allocation5 + $0xc8] sm:$0xff]  ;;  %v488_v49 = vld [vmem:[#allocation5 + $0x138] sm:$0xff] }
  0x63   : > { %1402 = vmatpush.msra.mxu1 %v457_v7  ;;  %1403 = vmatpush.msra.mxu2 %v457_v7  ;;  %v361_v43 = vld [vmem:[%s1952_s1 + $0x140] sm:$0xff]  ;;  %v504_v50 = vld [vmem:[#allocation5 + $0x1b8] sm:$0xff]  ;;  %v487_v52 = vld [vmem:[#allocation5 + $0x130] sm:$0xff] }
  0x64   : > { %1404 = vmatpush.msra.mxu3 %v457_v7  ;;  %520 = vmatpush.msra.mxu0 %v457_v7  ;;  %v393_v44 = vld [vmem:[%s1952_s1 + $0x240] sm:$0xff]  ;;  %v472_v51 = vld [vmem:[#allocation5 + $0xb8] sm:$0xff]  ;;  %v503_v53 = vld [vmem:[#allocation5 + $0x1b0] sm:$0xff] }
  0x65   : > { %1405 = vmatpush.msra.mxu1 %v456_v8  ;;  %1406 = vmatpush.msra.mxu2 %v456_v8  ;;  %v489_v45 = vld [vmem:[#allocation5 + $0x140] sm:$0xff]  ;;  %v471_v54 = vld [vmem:[#allocation5 + $0xb0] sm:$0xff]  ;;  %v486_v55 = vld [vmem:[#allocation5 + $0x128] sm:$0xff] }
  0x66   : > { %1407 = vmatpush.msra.mxu3 %v456_v8  ;;  %521 = vmatpush.msra.mxu0 %v456_v8  ;;  %v505_v46 = vld [vmem:[#allocation5 + $0x1c0] sm:$0xff]  ;;  %v502_v56 = vld [vmem:[#allocation5 + $0x1a8] sm:$0xff]  ;;  %v484_v0 = vld [vmem:[#allocation5 + $0x118] sm:$0xff] }
  0x67   : > { %1408 = vmatpush.msra.mxu1 %v455_v9  ;;  %1409 = vmatpush.msra.mxu2 %v455_v9  ;;  %v425_v47 = vld [vmem:[%s1952_s1 + $0x340] sm:$0xff]  ;;  %v470_v59 = vld [vmem:[#allocation5 + $0xa8] sm:$0xff]  ;;  %v500_v1 = vld [vmem:[#allocation5 + $0x198] sm:$0xff] }
  0x68   : > { %1410 = vmatpush.msra.mxu3 %v455_v9  ;;  %522 = vmatpush.msra.mxu0 %v455_v9  ;;  %v473_v48 = vld [vmem:[#allocation5 + $0xc0] sm:$0xff]  ;;  %v468_v2 = vld [vmem:[#allocation5 + $0x98] sm:$0xff]  ;;  %v483_v3 = vld [vmem:[#allocation5 + $0x110] sm:$0xff] }
  0x69   : > { %1411 = vmatpush.msra.mxu1 %v454_v10  ;;  %1412 = vmatpush.msra.mxu2 %v454_v10  ;;  %v365_v57 = vld [vmem:[%s1952_s1 + $0x160] sm:$0xff]  ;;  %v499_v4 = vld [vmem:[#allocation5 + $0x190] sm:$0xff]  ;;  %v482_v8 = vld [vmem:[#allocation5 + $0x108] sm:$0xff] }
  0x6a   : > { %1413 = vmatpush.msra.mxu3 %v454_v10  ;;  %523 = vmatpush.msra.mxu0 %v454_v10  ;;  %v397_v58 = vld [vmem:[%s1952_s1 + $0x260] sm:$0xff]  ;;  %v467_v5 = vld [vmem:[#allocation5 + $0x90] sm:$0xff]  ;;  %v498_v9 = vld [vmem:[#allocation5 + $0x188] sm:$0xff] }
  0x6b   : > { %1414 = vmatpush.msra.mxu1 %v453_v11  ;;  %1415 = vmatpush.msra.mxu2 %v453_v11  ;;  %v485_v60 = vld [vmem:[#allocation5 + $0x120] sm:$0xff] }
  0x6c   : > { %1416 = vmatpush.msra.mxu3 %v453_v11  ;;  %524 = vmatpush.msra.mxu0 %v453_v11  ;;  %v429_v61 = vld [vmem:[%s1952_s1 + $0x360] sm:$0xff]  ;;  %v466_v11 = vld [vmem:[#allocation5 + $0x88] sm:$0xff] }
  0x6d   : > { %1417 = vmatpush.msra.mxu1 %v452_v12  ;;  %1418 = vmatpush.msra.mxu2 %v452_v12  ;;  %v501_v62 = vld [vmem:[#allocation5 + $0x1a0] sm:$0xff] }
  0x6e   : > { %1419 = vmatpush.msra.mxu3 %v452_v12  ;;  %525 = vmatpush.msra.mxu0 %v452_v12  ;;  %v469_v63 = vld [vmem:[#allocation5 + $0xa0] sm:$0xff] }
  0x6f   : > { %1420 = vmatpush.msra.mxu1 %v451_v13  ;;  %1421 = vmatpush.msra.mxu2 %v451_v13  ;;  %v369_v6 = vld [vmem:[%s1952_s1 + $0x180] sm:$0xff] }
  0x70   : > { %1422 = vmatpush.msra.mxu3 %v451_v13  ;;  %526 = vmatpush.msra.mxu0 %v451_v13  ;;  %v401_v7 = vld [vmem:[%s1952_s1 + $0x280] sm:$0xff] }
  0x71   : > { %1423 = vmatpush.msra.mxu1 %v450_v14  ;;  %1424 = vmatpush.msra.mxu2 %v450_v14  ;;  %v433_v10 = vld [vmem:[%s1952_s1 + $0x380] sm:$0xff] }
  0x72   : > { %1425 = vmatpush.msra.mxu3 %v450_v14  ;;  %527 = vmatpush.msra.mxu0 %v450_v14  ;;  %v481_v12 = vld [vmem:[#allocation5 + $0x100] sm:$0xff] }
  0x73   : > { %1426 = vmatpush.msra.mxu1 %v449_v15  ;;  %1427 = vmatpush.msra.mxu2 %v449_v15  ;;  %v497_v13 = vld [vmem:[#allocation5 + $0x180] sm:$0xff] }
  0x74   : > { %553 = vmatmul.f32.vlgmr.msra.gmra.mxu1 %v353_v16  ;;  %577 = vmatmul.f32.vlgmr.msra.gmra.mxu2 %v385_v17  ;;  %v465_v14 = vld [vmem:[#allocation5 + $0x80] sm:$0xff] }
  0x75   : > { %739 = vmatpush.msrb.mxu2 %v496_v18  ;;  %1428 = vmatpush.msra.mxu3 %v449_v15  ;;  %v373_v16 = vld [vmem:[%s1952_s1 + $0x1a0] sm:$0xff] }
  0x76   : > { %601 = vmatmul.f32.vlgmr.msra.gmra.mxu3 %v417_v19  ;;  %626 = vmatpush.msrb.mxu1 %v480_v20  ;;  %v405_v17 = vld [vmem:[%s1952_s1 + $0x2a0] sm:$0xff] }
  0x77   : > { %852 = vmatpush.msrb.mxu3 %v512_v21  ;;  %740 = vmatpush.msrb.mxu2 %v495_v22  ;;  %v437_v18 = vld [vmem:[%s1952_s1 + $0x3a0] sm:$0xff] }
  0x78   : > { %627 = vmatpush.msrb.mxu1 %v479_v23  ;;  %528 = vmatpush.msra.mxu0 %v449_v15  ;;  %v321_v15 = vld [vmem:[%s1952_s1] sm:$0xff] }
  0x79   : > { %853 = vmatpush.msrb.mxu3 %v511_v24  ;;  %741 = vmatpush.msrb.mxu2 %v494_v25  ;;  %v325_v19 = vld [vmem:[%s1952_s1 + $0x20] sm:$0xff] }
  0x7a   : > { %628 = vmatpush.msrb.mxu1 %v478_v26  ;;  %529 = vmatmul.f32.vlgmr.msra.gmra.mxu0 %v321_v15  ;;  %v377_v20 = vld [vmem:[%s1952_s1 + $0x1c0] sm:$0xff]  ;;  %v362_v15 = vld [vmem:[%s1952_s1 + $0x148] sm:$0xff] }
  0x7b   : > { %854 = vmatpush.msrb.mxu3 %v510_v27  ;;  %742 = vmatpush.msrb.mxu2 %v493_v28  ;;  %v409_v21 = vld [vmem:[%s1952_s1 + $0x2c0] sm:$0xff]  ;;  %v322_v28 = vld [vmem:[%s1952_s1 + $0x8] sm:$0xff] }
  0x7c   : > { %556 = vmatmul.f32.gmra.mxu1 %v357_v29  ;;  %580 = vmatmul.f32.gmra.mxu2 %v389_v30  ;;  %v441_v22 = vld [vmem:[%s1952_s1 + $0x3c0] sm:$0xff]  ;;  %v323_v29 = vld [vmem:[%s1952_s1 + $0x10] sm:$0xff]  ;;  %v324_v30 = vld [vmem:[%s1952_s1 + $0x18] sm:$0xff] }
  0x7d   : > { %855 = vmatpush.msrb.mxu3 %v509_v31  ;;  %629 = vmatpush.msrb.mxu1 %v477_v32  ;;  %v329_v23 = vld [vmem:[%s1952_s1 + $0x40] sm:$0xff]  ;;  %v326_v32 = vld [vmem:[%s1952_s1 + $0x28] sm:$0xff] }
  0x7e   : > { %604 = vmatmul.f32.gmra.mxu3 %v421_v33  ;;  %743 = vmatpush.msrb.mxu2 %v492_v34  ;;  %v381_v24 = vld [vmem:[%s1952_s1 + $0x1e0] sm:$0xff]  ;;  %v327_v33 = vld [vmem:[%s1952_s1 + $0x30] sm:$0xff]  ;;  %v328_v34 = vld [vmem:[%s1952_s1 + $0x38] sm:$0xff] }
  0x7f   : > { %856 = vmatpush.msrb.mxu3 %v508_v35  ;;  %630 = vmatpush.msrb.mxu1 %v476_v36  ;;  %v413_v25 = vld [vmem:[%s1952_s1 + $0x2e0] sm:$0xff]  ;;  %v330_v36 = vld [vmem:[%s1952_s1 + $0x48] sm:$0xff] }
  0x80   : > { %744 = vmatpush.msrb.mxu2 %v491_v37  ;;  %v445_v26 = vld [vmem:[%s1952_s1 + $0x3e0] sm:$0xff]  ;;  %v331_v37 = vld [vmem:[%s1952_s1 + $0x50] sm:$0xff] }
  0x81   : > { %857 = vmatpush.msrb.mxu3 %v507_v38  ;;  %631 = vmatpush.msrb.mxu1 %v475_v39  ;;  %v333_v27 = vld [vmem:[%s1952_s1 + $0x60] sm:$0xff]  ;;  %v332_v38 = vld [vmem:[%s1952_s1 + $0x58] sm:$0xff] }
  0x82   : > { %745 = vmatpush.msrb.mxu2 %v490_v40  ;;  %532 = vmatmul.f32.gmra.mxu0 %v325_v19  ;;  %v337_v31 = vld [vmem:[%s1952_s1 + $0x80] sm:$0xff]  ;;  %v334_v40 = vld [vmem:[%s1952_s1 + $0x68] sm:$0xff] }
  0x83   : > { %858 = vmatpush.msrb.mxu3 %v506_v41  ;;  %632 = vmatpush.msrb.mxu1 %v474_v42  ;;  %v341_v35 = vld [vmem:[%s1952_s1 + $0xa0] sm:$0xff]  ;;  %v335_v41 = vld [vmem:[%s1952_s1 + $0x70] sm:$0xff]  ;;  %v336_v42 = vld [vmem:[%s1952_s1 + $0x78] sm:$0xff] }
  0x84   : > { %559 = vmatmul.f32.gmra.mxu1 %v361_v43  ;;  %583 = vmatmul.f32.gmra.mxu2 %v393_v44  ;;  %v345_v39 = vld [vmem:[%s1952_s1 + $0xc0] sm:$0xff]  ;;  %v338_v44 = vld [vmem:[%s1952_s1 + $0x88] sm:$0xff] }
  0x85   : > { %746 = vmatpush.msrb.mxu2 %v489_v45  ;;  %859 = vmatpush.msrb.mxu3 %v505_v46  ;;  %v349_v43 = vld [vmem:[%s1952_s1 + $0xe0] sm:$0xff]  ;;  %v339_v45 = vld [vmem:[%s1952_s1 + $0x90] sm:$0xff]  ;;  %v340_v46 = vld [vmem:[%s1952_s1 + $0x98] sm:$0xff] }
  0x86   : > { %607 = vmatmul.f32.gmra.mxu3 %v425_v47  ;;  %633 = vmatpush.msrb.mxu1 %v473_v48  ;;  %v342_v47 = vld [vmem:[%s1952_s1 + $0xa8] sm:$0xff]  ;;  %v343_v48 = vld [vmem:[%s1952_s1 + $0xb0] sm:$0xff] }
  0x87   : > { %747 = vmatpush.msrb.mxu2 %v488_v49  ;;  %860 = vmatpush.msrb.mxu3 %v504_v50  ;;  %v344_v49 = vld [vmem:[%s1952_s1 + $0xb8] sm:$0xff] }
  0x88   : > { %634 = vmatpush.msrb.mxu1 %v472_v51  ;;  %v980_v50 = vld [vmem:[#allocation8 + $0x78] sm:$0xff]  ;;  %v979_v51 = vld [vmem:[#allocation8 + $0x70] sm:$0xff] }
  0x89   : > { %748 = vmatpush.msrb.mxu2 %v487_v52  ;;  %861 = vmatpush.msrb.mxu3 %v503_v53  ;;  %v346_v52 = vld [vmem:[%s1952_s1 + $0xc8] sm:$0xff]  ;;  %v347_v53 = vld [vmem:[%s1952_s1 + $0xd0] sm:$0xff] }
  0x8a   : > { %635 = vmatpush.msrb.mxu1 %v471_v54  ;;  %535 = vmatmul.f32.gmra.mxu0 %v329_v23  ;;  %v348_v54 = vld [vmem:[%s1952_s1 + $0xd8] sm:$0xff]  ;;  %v366_v23 = vld [vmem:[%s1952_s1 + $0x168] sm:$0xff] }
  0x8b   : > { %749 = vmatpush.msrb.mxu2 %v486_v55  ;;  %862 = vmatpush.msrb.mxu3 %v502_v56  ;;  %v978_v55 = vld [vmem:[#allocation8 + $0x68] sm:$0xff]  ;;  %v977_v56 = vld [vmem:[#allocation8 + $0x60] sm:$0xff] }
  0x8c   : > { %562 = vmatmul.f32.gmra.mxu1 %v365_v57  ;;  %586 = vmatmul.f32.gmra.mxu2 %v397_v58  ;;  %v350_v57 = vld [vmem:[%s1952_s1 + $0xe8] sm:$0xff]  ;;  %v351_v58 = vld [vmem:[%s1952_s1 + $0xf0] sm:$0xff] }
  0x8d   : > { %636 = vmatpush.msrb.mxu1 %v470_v59  ;;  %750 = vmatpush.msrb.mxu2 %v485_v60  ;;  %v352_v59 = vld [vmem:[%s1952_s1 + $0xf8] sm:$0xff] }
  0x8e   : > { %610 = vmatmul.f32.gmra.mxu3 %v429_v61  ;;  %985 = vmatpush.msrb.mxu0 %v980_v50  ;;  %v976_v60 = vld [vmem:[#allocation8 + $0x58] sm:$0xff]  ;;  %v975_v61 = vld [vmem:[#allocation8 + $0x50] sm:$0xff] }
  0x8f   : > { %863 = vmatpush.msrb.mxu3 %v501_v62  ;;  %637 = vmatpush.msrb.mxu1 %v469_v63  ;;  %v354_v63 = vld [vmem:[%s1952_s1 + $0x108] sm:$0xff] }
  0x90   : > { %751 = vmatpush.msrb.mxu2 %v484_v0  ;;  %986 = vmatpush.msrb.mxu0 %v979_v51  ;;  %v355_v0 = vld [vmem:[%s1952_s1 + $0x110] sm:$0xff] }
  0x91   : > { %864 = vmatpush.msrb.mxu3 %v500_v1  ;;  %638 = vmatpush.msrb.mxu1 %v468_v2  ;;  %v356_v1 = vld [vmem:[%s1952_s1 + $0x118] sm:$0xff]  ;;  %v974_v2 = vld [vmem:[#allocation8 + $0x48] sm:$0xff] }
  0x92   : > { %752 = vmatpush.msrb.mxu2 %v483_v3  ;;  %538 = vmatmul.f32.gmra.mxu0 %v333_v27 }
  0x93   : > { %865 = vmatpush.msrb.mxu3 %v499_v4  ;;  %639 = vmatpush.msrb.mxu1 %v467_v5  ;;  %v973_v4 = vld [vmem:[#allocation8 + $0x40] sm:$0xff] }
  0x94   : > { %565 = vmatmul.f32.gmra.mxu1 %v369_v6  ;;  %589 = vmatmul.f32.gmra.mxu2 %v401_v7  ;;  %v358_v7 = vld [vmem:[%s1952_s1 + $0x128] sm:$0xff] }
  0x95   : > { %753 = vmatpush.msrb.mxu2 %v482_v8  ;;  %866 = vmatpush.msrb.mxu3 %v498_v9  ;;  %v359_v8 = vld [vmem:[%s1952_s1 + $0x130] sm:$0xff]  ;;  %v360_v9 = vld [vmem:[%s1952_s1 + $0x138] sm:$0xff] }
  0x96   : > { %613 = vmatmul.f32.gmra.mxu3 %v433_v10  ;;  %640 = vmatpush.msrb.mxu1 %v466_v11  ;;  %v972_v10 = vld [vmem:[#allocation8 + $0x38] sm:$0xff] }
  0x97   : > { %754 = vmatpush.msrb.mxu2 %v481_v12  ;;  %867 = vmatpush.msrb.mxu3 %v497_v13  ;;  %v971_v12 = vld [vmem:[#allocation8 + $0x30] sm:$0xff] }
  0x98   : > { %641 = vmatpush.msrb.mxu1 %v465_v14  ;;  %987 = vmatpush.msrb.mxu0 %v978_v55 }
  0x9a   : > { %541 = vmatmul.f32.gmra.mxu0 %v337_v31  ;;  %v370_v31 = vld [vmem:[%s1952_s1 + $0x188] sm:$0xff] }
  0x9b   : > { %988 = vmatpush.msrb.mxu0 %v977_v56 }
  0x9c   : > { %568 = vmatmul.f32.gmra.mxu1 %v373_v16  ;;  %592 = vmatmul.f32.gmra.mxu2 %v405_v17  ;;  %v363_v16 = vld [vmem:[%s1952_s1 + $0x150] sm:$0xff]  ;;  %v364_v17 = vld [vmem:[%s1952_s1 + $0x158] sm:$0xff] }
  0x9d   : > { %989 = vmatpush.msrb.mxu0 %v976_v60  ;;  %v387_v60 = vld [vmem:[%s1952_s1 + $0x210] sm:$0xff] }
  0x9e   : > { %616 = vmatmul.f32.gmra.mxu3 %v437_v18  ;;  %v970_v18 = vld [vmem:[#allocation8 + $0x28] sm:$0xff] }
  0x9f   : > { %990 = vmatpush.msrb.mxu0 %v975_v61  ;;  %v388_v61 = vld [vmem:[%s1952_s1 + $0x218] sm:$0xff] }
  0xa1   : > { %991 = vmatpush.msrb.mxu0 %v974_v2 }
  0xa2   : > { %544 = vmatmul.f32.gmra.mxu0 %v341_v35 }
  0xa3   : > { %992 = vmatpush.msrb.mxu0 %v973_v4 }
  0xa4   : > { %571 = vmatmul.f32.gmra.mxu1 %v377_v20  ;;  %595 = vmatmul.f32.gmra.mxu2 %v409_v21  ;;  %v969_v20 = vld [vmem:[#allocation8 + $0x20] sm:$0xff] }
  0xa5   : > { %993 = vmatpush.msrb.mxu0 %v972_v10 }
  0xa6   : > { %619 = vmatmul.f32.gmra.mxu3 %v441_v22 }
  0xa7   : > { %994 = vmatpush.msrb.mxu0 %v971_v12  ;;  %v392_v12 = vld [vmem:[%s1952_s1 + $0x238] sm:$0xff] }
  0xa9   : > { %995 = vmatpush.msrb.mxu0 %v970_v18 }
  0xaa   : > { %547 = vmatmul.f32.gmra.mxu0 %v345_v39  ;;  %v374_v39 = vld [vmem:[%s1952_s1 + $0x1a8] sm:$0xff] }
  0xab   : > { %996 = vmatpush.msrb.mxu0 %v969_v20 }
  0xac   : > { %574 = vmatmul.f32.gmra.mxu1 %v381_v24  ;;  %598 = vmatmul.f32.gmra.mxu2 %v413_v25  ;;  %v367_v24 = vld [vmem:[%s1952_s1 + $0x170] sm:$0xff]  ;;  %v368_v25 = vld [vmem:[%s1952_s1 + $0x178] sm:$0xff] }
  0xae   : > { %622 = vmatmul.f32.gmra.mxu3 %v445_v26  ;;  %v968_v26 = vld [vmem:[#allocation8 + $0x18] sm:$0xff] }
  0xaf   : > { %997 = vmatpush.msrb.mxu0 %v968_v26 }
  0xb2   : > { %550 = vmatmul.f32.gmra.mxu0 %v349_v43 }
  0xb4   : > { %642 = vmatmul.f32.vlgmr.msrb.gmra.mxu1 %v322_v28  ;;  %755 = vmatmul.f32.vlgmr.msrb.gmra.mxu2 %v323_v29  ;;  %v967_v28 = vld [vmem:[#allocation8 + $0x10] sm:$0xff] }
  0xb5   : > { %998 = vmatpush.msrb.mxu0 %v967_v28  ;;  %v396_v28 = vld [vmem:[%s1952_s1 + $0x258] sm:$0xff] }
  0xb6   : > { %868 = vmatmul.f32.vlgmr.msrb.gmra.mxu3 %v324_v30 }
  0xbc   : > { %645 = vmatmul.f32.gmra.mxu1 %v326_v32  ;;  %758 = vmatmul.f32.gmra.mxu2 %v327_v33  ;;  %v371_v32 = vld [vmem:[%s1952_s1 + $0x190] sm:$0xff]  ;;  %v372_v33 = vld [vmem:[%s1952_s1 + $0x198] sm:$0xff] }
  0xbe   : > { %871 = vmatmul.f32.gmra.mxu3 %v328_v34  ;;  %v966_v34 = vld [vmem:[#allocation8 + $0x8] sm:$0xff] }
  0xbf   : > { %999 = vmatpush.msrb.mxu0 %v966_v34 }
  0xc4   : > { %648 = vmatmul.f32.gmra.mxu1 %v330_v36  ;;  %761 = vmatmul.f32.gmra.mxu2 %v331_v37  ;;  %v965_v36 = vld [vmem:[#allocation8] sm:$0xff] }
  0xc5   : > { %1000 = vmatpush.msrb.mxu0 %v965_v36 }
  0xc6   : > { %874 = vmatmul.f32.gmra.mxu3 %v332_v38 }
  0xcc   : > { %651 = vmatmul.f32.gmra.mxu1 %v334_v40  ;;  %764 = vmatmul.f32.gmra.mxu2 %v335_v41  ;;  %v375_v40 = vld [vmem:[%s1952_s1 + $0x1b0] sm:$0xff]  ;;  %v376_v41 = vld [vmem:[%s1952_s1 + $0x1b8] sm:$0xff] }
  0xce   : > { %877 = vmatmul.f32.gmra.mxu3 %v336_v42 }
  0xd4   : > { %654 = vmatmul.f32.gmra.mxu1 %v338_v44  ;;  %767 = vmatmul.f32.gmra.mxu2 %v339_v45  ;;  %v378_v45 = vld [vmem:[%s1952_s1 + $0x1c8] sm:$0xff] }
  0xd6   : > { %880 = vmatmul.f32.gmra.mxu3 %v340_v46  ;;  %v379_v46 = vld [vmem:[%s1952_s1 + $0x1d0] sm:$0xff] }
  0xdc   : > { %657 = vmatmul.f32.gmra.mxu1 %v342_v47  ;;  %770 = vmatmul.f32.gmra.mxu2 %v343_v48  ;;  %v380_v48 = vld [vmem:[%s1952_s1 + $0x1d8] sm:$0xff] }
  0xde   : > { %883 = vmatmul.f32.gmra.mxu3 %v344_v49 }
  0xe4   : > { %660 = vmatmul.f32.gmra.mxu1 %v346_v52  ;;  %773 = vmatmul.f32.gmra.mxu2 %v347_v53  ;;  %v382_v52 = vld [vmem:[%s1952_s1 + $0x1e8] sm:$0xff]  ;;  %v383_v53 = vld [vmem:[%s1952_s1 + $0x1f0] sm:$0xff] }
  0xe6   : > { %886 = vmatmul.f32.gmra.mxu3 %v348_v54  ;;  %v384_v54 = vld [vmem:[%s1952_s1 + $0x1f8] sm:$0xff] }
  0xec   : > { %663 = vmatmul.f32.gmra.mxu1 %v350_v57  ;;  %776 = vmatmul.f32.gmra.mxu2 %v351_v58 }
  0xee   : > { %889 = vmatmul.f32.gmra.mxu3 %v352_v59  ;;  %v386_v59 = vld [vmem:[%s1952_s1 + $0x208] sm:$0xff] }
  0xf1   : > { %v2031_v62 = vpop.f32.mrf.mxu1 }
  0xf4   : > { %666 = vmatmul.f32.gmra.mxu1 %v354_v63  ;;  %779 = vmatmul.f32.gmra.mxu2 %v355_v0 }
  0xf6   : > { %892 = vmatmul.f32.gmra.mxu3 %v356_v1 }
  0xf7   : > { %v2036_v3 = vpop.f32.mrf.mxu2  ;;  %v530_v47 = vpop.f32.mrf.mxu0 }
  0xf9   : > { %v2038_v5 = vpop.f32.mrf.mxu1  ;;  %v2040_v6 = vpop.f32.mrf.mxu3 }
  0xfc   : > { %669 = vmatmul.f32.gmra.mxu1 %v358_v7  ;;  %782 = vmatmul.f32.gmra.mxu2 %v359_v8  ;;  %v390_v8 = vld [vmem:[%s1952_s1 + $0x228] sm:$0xff] }
  0xfe   : > { %895 = vmatmul.f32.gmra.mxu3 %v360_v9  ;;  %v391_v9 = vld [vmem:[%s1952_s1 + $0x230] sm:$0xff] }
  0xff   : > { %v2045_v11 = vpop.f32.mrf.mxu2  ;;  %v533_v55 = vpop.f32.mrf.mxu0 }
 0x101   : > { %v2047_v13 = vpop.f32.mrf.mxu1  ;;  %v2049_v14 = vpop.f32.mrf.mxu3 }
 0x104   : > { %672 = vmatmul.f32.gmra.mxu1 %v362_v15  ;;  %785 = vmatmul.f32.gmra.mxu2 %v363_v16 }
 0x106   : > { %898 = vmatmul.f32.gmra.mxu3 %v364_v17 }
 0x107   : > { %v2054_v19 = vpop.f32.mrf.mxu2  ;;  %v536_v0 = vpop.f32.mrf.mxu0 }
 0x109   : > { %v2056_v21 = vpop.f32.mrf.mxu1  ;;  %v2058_v22 = vpop.f32.mrf.mxu3 }
 0x10c   : > { %675 = vmatmul.f32.gmra.mxu1 %v366_v23  ;;  %788 = vmatmul.f32.gmra.mxu2 %v367_v24  ;;  %v394_v24 = vld [vmem:[%s1952_s1 + $0x248] sm:$0xff] }
 0x10e   : > { %901 = vmatmul.f32.gmra.mxu3 %v368_v25  ;;  %v395_v25 = vld [vmem:[%s1952_s1 + $0x250] sm:$0xff] }
 0x10f   : > { %v2063_v27 = vpop.f32.mrf.mxu2  ;;  %v539_v18 = vpop.f32.mrf.mxu0 }
 0x111   : > { %v2065_v29 = vpop.f32.mrf.mxu1  ;;  %v2067_v30 = vpop.f32.mrf.mxu3 }
 0x114   : > { %678 = vmatmul.f32.gmra.mxu1 %v370_v31  ;;  %791 = vmatmul.f32.gmra.mxu2 %v371_v32 }
 0x116   : > { %904 = vmatmul.f32.gmra.mxu3 %v372_v33 }
 0x117   : > { %v2072_v35 = vpop.f32.mrf.mxu2 }
 0x119   : > { %v2074_v37 = vpop.f32.mrf.mxu1  ;;  %v2076_v38 = vpop.f32.mrf.mxu3 }
 0x11c   : > { %681 = vmatmul.f32.gmra.mxu1 %v374_v39  ;;  %794 = vmatmul.f32.gmra.mxu2 %v375_v40  ;;  %v398_v39 = vld [vmem:[%s1952_s1 + $0x268] sm:$0xff]  ;;  %v399_v40 = vld [vmem:[%s1952_s1 + $0x270] sm:$0xff] }
 0x11e   : > { %907 = vmatmul.f32.gmra.mxu3 %v376_v41 }
 0x11f   : > { %v2081_v42 = vpop.f32.mrf.mxu2 }
 0x121   : > { %v2083_v43 = vpop.f32.mrf.mxu1  ;;  %v2085_v44 = vpop.f32.mrf.mxu3 }
 0x124   : > { %684 = vmatmul.f32.gmra.mxu1 %v378_v45  ;;  %797 = vmatmul.f32.gmra.mxu2 %v379_v46  ;;  %v542_v45 = vpop.f32.mrf.mxu0  ;;  %v400_v46 = vld [vmem:[%s1952_s1 + $0x278] sm:$0xff] }
 0x126   : > { %910 = vmatmul.f32.gmra.mxu3 %v380_v48 }
 0x127   : > { %v2090_v49 = vpop.f32.mrf.mxu2 }
 0x129   : > { %v2092_v50 = vpop.f32.mrf.mxu1  ;;  %v2094_v51 = vpop.f32.mrf.mxu3 }
 0x12c   : > { %687 = vmatmul.f32.gmra.mxu1 %v382_v52  ;;  %800 = vmatmul.f32.gmra.mxu2 %v383_v53 }
 0x12e   : > { %913 = vmatmul.f32.gmra.mxu3 %v384_v54 }
 0x12f   : > { %v2099_v56 = vpop.f32.mrf.mxu2 }
 0x131   : > { %v2101_v57 = vpop.f32.mrf.mxu3  ;;  %v643_v58 = vpop.f32.mrf.mxu1 }
 0x132   : > { %v644_v63 = vadd.f32 %v643_v58, %v530_v47  ;;  %v403_v58 = vld [vmem:[%s1952_s1 + $0x290] sm:$0xff] }
 0x134   : > { %690 = vmatmul.f32.gmra.mxu1 %v386_v59  ;;  %803 = vmatmul.f32.gmra.mxu2 %v387_v60  ;;  %v404_v60 = vld [vmem:[%s1952_s1 + $0x298] sm:$0xff] }
 0x136   : > { %916 = vmatmul.f32.gmra.mxu3 %v388_v61 }
 0x137   : > { %v756_v1 = vpop.f32.mrf.mxu2 }
 0x138   : > { %v757_v2 = vadd.f32 %v756_v1, %v644_v63  ;;  %v545_v63 = vpop.f32.mrf.mxu0 }
 0x139   : > { %v646_v4 = vpop.f32.mrf.mxu1  ;;  %v869_v7 = vpop.f32.mrf.mxu3 }
 0x13a   : > { %v870_v10 = vadd.f32 %v869_v7, %v757_v2  ;;  %v647_v15 = vadd.f32 %v646_v4, %v533_v55  ;;  %v402_v55 = vld [vmem:[%s1952_s1 + $0x288] sm:$0xff] }
 0x13b   : > { %v406_v7 = vld [vmem:[%s1952_s1 + $0x2a8] sm:$0xff] }
 0x13c   : > { %693 = vmatmul.f32.gmra.mxu1 %v390_v8  ;;  %806 = vmatmul.f32.gmra.mxu2 %v391_v9  ;;  %v407_v8 = vld [vmem:[%s1952_s1 + $0x2b0] sm:$0xff] }
 0x13d   : > { %1001 = vmatmul.f32.vlgmr.msrb.gmra.mxu0 %v870_v10  ;;  %v408_v10 = vld [vmem:[%s1952_s1 + $0x2b8] sm:$0xff] }
 0x13e   : > { %919 = vmatmul.f32.gmra.mxu3 %v392_v12 }
 0x13f   : > { %v759_v16 = vpop.f32.mrf.mxu2 }
 0x140   : > { %v760_v17 = vadd.f32 %v759_v16, %v647_v15  ;;  %v548_v15 = vpop.f32.mrf.mxu0 }
 0x141   : > { %v649_v20 = vpop.f32.mrf.mxu1  ;;  %v872_v23 = vpop.f32.mrf.mxu3 }
 0x142   : > { %v873_v26 = vadd.f32 %v872_v23, %v760_v17  ;;  %v650_v31 = vadd.f32 %v649_v20, %v536_v0  ;;  %v410_v23 = vld [vmem:[%s1952_s1 + $0x2c8] sm:$0xff] }
 0x144   : > { %696 = vmatmul.f32.gmra.mxu1 %v394_v24  ;;  %809 = vmatmul.f32.gmra.mxu2 %v395_v25  ;;  %v411_v24 = vld [vmem:[%s1952_s1 + $0x2d0] sm:$0xff] }
 0x145   : > { %1004 = vmatmul.f32.gmra.mxu0 %v873_v26  ;;  %v412_v26 = vld [vmem:[%s1952_s1 + $0x2d8] sm:$0xff] }
 0x146   : > { %922 = vmatmul.f32.gmra.mxu3 %v396_v28 }
 0x147   : > { %v762_v32 = vpop.f32.mrf.mxu2 }
 0x148   : > { %v763_v33 = vadd.f32 %v762_v32, %v650_v31 }
 0x149   : > { %v652_v34 = vpop.f32.mrf.mxu1  ;;  %v875_v36 = vpop.f32.mrf.mxu3 }
 0x14a   : > { %v876_v41 = vadd.f32 %v875_v36, %v763_v33  ;;  %v653_v47 = vadd.f32 %v652_v34, %v539_v18  ;;  %v551_v33 = vpop.f32.mrf.mxu0 }
 0x14c   : > { %699 = vmatmul.f32.gmra.mxu1 %v398_v39  ;;  %812 = vmatmul.f32.gmra.mxu2 %v399_v40  ;;  %v414_v39 = vld [vmem:[%s1952_s1 + $0x2e8] sm:$0xff]  ;;  %v415_v40 = vld [vmem:[%s1952_s1 + $0x2f0] sm:$0xff] }
 0x14d   : > { %1007 = vmatmul.f32.gmra.mxu0 %v876_v41 }
 0x14e   : > { %925 = vmatmul.f32.gmra.mxu3 %v400_v46 }
 0x14f   : > { %v765_v48 = vpop.f32.mrf.mxu2 }
 0x150   : > { %v766_v52 = vadd.f32 %v765_v48, %v653_v47 }
 0x151   : > { %v655_v53 = vpop.f32.mrf.mxu1  ;;  %v878_v54 = vpop.f32.mrf.mxu3 }
 0x152   : > { %v879_v59 = vadd.f32 %v878_v54, %v766_v52  ;;  %v656_v61 = vadd.f32 %v655_v53, %v542_v45  ;;  %v416_v45 = vld [vmem:[%s1952_s1 + $0x2f8] sm:$0xff]  ;;  %v418_v54 = vld [vmem:[%s1952_s1 + $0x308] sm:$0xff] }
 0x154   : > { %702 = vmatmul.f32.gmra.mxu1 %v402_v55  ;;  %815 = vmatmul.f32.gmra.mxu2 %v403_v58  ;;  %v419_v55 = vld [vmem:[%s1952_s1 + $0x310] sm:$0xff] }
 0x155   : > { %1010 = vmatmul.f32.gmra.mxu0 %v879_v59  ;;  %v420_v59 = vld [vmem:[%s1952_s1 + $0x318] sm:$0xff] }
 0x156   : > { %928 = vmatmul.f32.gmra.mxu3 %v404_v60 }
 0x157   : > { %v768_v0 = vpop.f32.mrf.mxu2 }
 0x158   : > { %v769_v1 = vadd.f32 %v768_v0, %v656_v61 }
 0x159   : > { %v658_v2 = vpop.f32.mrf.mxu1  ;;  %v881_v4 = vpop.f32.mrf.mxu3 }
 0x15a   : > { %v882_v9 = vadd.f32 %v881_v4, %v769_v1  ;;  %v659_v12 = vadd.f32 %v658_v2, %v545_v63  ;;  %v422_v2 = vld [vmem:[%s1952_s1 + $0x328] sm:$0xff]  ;;  %v423_v4 = vld [vmem:[%s1952_s1 + $0x330] sm:$0xff] }
 0x15c   : > { %705 = vmatmul.f32.gmra.mxu1 %v406_v7  ;;  %818 = vmatmul.f32.gmra.mxu2 %v407_v8  ;;  %v424_v8 = vld [vmem:[%s1952_s1 + $0x338] sm:$0xff] }
 0x15d   : > { %1013 = vmatmul.f32.gmra.mxu0 %v882_v9 }
 0x15e   : > { %931 = vmatmul.f32.gmra.mxu3 %v408_v10 }
 0x15f   : > { %v771_v16 = vpop.f32.mrf.mxu2 }
 0x160   : > { %v772_v17 = vadd.f32 %v771_v16, %v659_v12  ;;  %v426_v16 = vld [vmem:[%s1952_s1 + $0x348] sm:$0xff] }
 0x161   : > { %v661_v18 = vpop.f32.mrf.mxu1  ;;  %v884_v20 = vpop.f32.mrf.mxu3 }
 0x162   : > { %v885_v25 = vadd.f32 %v884_v20, %v772_v17  ;;  %v662_v28 = vadd.f32 %v661_v18, %v548_v15  ;;  %v427_v17 = vld [vmem:[%s1952_s1 + $0x350] sm:$0xff]  ;;  %v428_v20 = vld [vmem:[%s1952_s1 + $0x358] sm:$0xff] }
 0x164   : > { %708 = vmatmul.f32.gmra.mxu1 %v410_v23  ;;  %821 = vmatmul.f32.gmra.mxu2 %v411_v24 }
 0x165   : > { %1016 = vmatmul.f32.gmra.mxu0 %v885_v25 }
 0x166   : > { %934 = vmatmul.f32.gmra.mxu3 %v412_v26 }
 0x167   : > { %v774_v31 = vpop.f32.mrf.mxu2 }
 0x168   : > { %v775_v32 = vadd.f32 %v774_v31, %v662_v28  ;;  %v430_v28 = vld [vmem:[%s1952_s1 + $0x368] sm:$0xff]  ;;  %v431_v31 = vld [vmem:[%s1952_s1 + $0x370] sm:$0xff] }
 0x169   : > { %v664_v34 = vpop.f32.mrf.mxu1  ;;  %v887_v36 = vpop.f32.mrf.mxu3 }
 0x16a   : > { %v888_v41 = vadd.f32 %v887_v36, %v775_v32  ;;  %v665_v46 = vadd.f32 %v664_v34, %v551_v33  ;;  %v432_v33 = vld [vmem:[%s1952_s1 + $0x378] sm:$0xff] }
 0x16c   : > { %711 = vmatmul.f32.gmra.mxu1 %v414_v39  ;;  %824 = vmatmul.f32.gmra.mxu2 %v415_v40 }
 0x16d   : > { %1019 = vmatmul.f32.gmra.mxu0 %v888_v41  ;;  %v434_v41 = vld [vmem:[%s1952_s1 + $0x388] sm:$0xff] }
 0x16e   : > { %937 = vmatmul.f32.gmra.mxu3 %v416_v45  ;;  %v435_v45 = vld [vmem:[%s1952_s1 + $0x390] sm:$0xff] }
 0x16f   : > { %v777_v47 = vpop.f32.mrf.mxu2 }
 0x170   : > { %v778_v48 = vadd.f32 %v777_v47, %v665_v46  ;;  %v436_v47 = vld [vmem:[%s1952_s1 + $0x398] sm:$0xff] }
 0x171   : > { %v667_v52 = vpop.f32.mrf.mxu1  ;;  %v890_v53 = vpop.f32.mrf.mxu3 }
 0x172   : > { %v891_v58 = vadd.f32 %v890_v53, %v778_v48  ;;  %v668_v60 = vadd.f32 %v667_v52, %v2031_v62 }
 0x174   : > { %714 = vmatmul.f32.gmra.mxu1 %v418_v54  ;;  %827 = vmatmul.f32.gmra.mxu2 %v419_v55  ;;  %v438_v55 = vld [vmem:[%s1952_s1 + $0x3a8] sm:$0xff] }
 0x175   : > { %1022 = vmatmul.f32.gmra.mxu0 %v891_v58  ;;  %v439_v58 = vld [vmem:[%s1952_s1 + $0x3b0] sm:$0xff] }
 0x176   : > { %940 = vmatmul.f32.gmra.mxu3 %v420_v59 }
 0x177   : > { %v780_v61 = vpop.f32.mrf.mxu2 }
 0x178   : > { %v781_v63 = vadd.f32 %v780_v61, %v668_v60  ;;  %v440_v60 = vld [vmem:[%s1952_s1 + $0x3b8] sm:$0xff] }
 0x179   : > { %v670_v0 = vpop.f32.mrf.mxu1  ;;  %v893_v1 = vpop.f32.mrf.mxu3 }
 0x17a   : > { %v894_v7 = vadd.f32 %v893_v1, %v781_v63  ;;  %v671_v9 = vadd.f32 %v670_v0, %v2038_v5 }
 0x17c   : > { %717 = vmatmul.f32.gmra.mxu1 %v422_v2  ;;  %830 = vmatmul.f32.gmra.mxu2 %v423_v4  ;;  %v442_v2 = vld [vmem:[%s1952_s1 + $0x3c8] sm:$0xff]  ;;  %v443_v4 = vld [vmem:[%s1952_s1 + $0x3d0] sm:$0xff] }
 0x17d   : > { %1025 = vmatmul.f32.gmra.mxu0 %v894_v7 }
 0x17e   : > { %943 = vmatmul.f32.gmra.mxu3 %v424_v8  ;;  %v444_v8 = vld [vmem:[%s1952_s1 + $0x3d8] sm:$0xff] }
 0x17f   : > { %v783_v10 = vpop.f32.mrf.mxu2 }
 0x180   : > { %v784_v62 = vadd.f32 %v783_v10, %v671_v9 }
 0x181   : > { %v673_v12 = vpop.f32.mrf.mxu1  ;;  %v896_v15 = vpop.f32.mrf.mxu3 }
 0x182   : > { %v897_v18 = vadd.f32 %v896_v15, %v784_v62  ;;  %v674_v23 = vadd.f32 %v673_v12, %v2047_v13  ;;  %v446_v15 = vld [vmem:[%s1952_s1 + $0x3e8] sm:$0xff] }
 0x184   : > { %720 = vmatmul.f32.gmra.mxu1 %v426_v16  ;;  %833 = vmatmul.f32.gmra.mxu2 %v427_v17  ;;  %v447_v16 = vld [vmem:[%s1952_s1 + $0x3f0] sm:$0xff] }
 0x185   : > { %1028 = vmatmul.f32.gmra.mxu0 %v897_v18  ;;  %v448_v18 = vld [vmem:[%s1952_s1 + $0x3f8] sm:$0xff] }
 0x186   : > { %946 = vmatmul.f32.gmra.mxu3 %v428_v20 }
 0x187   : > { %v786_v24 = vpop.f32.mrf.mxu2 }
 0x188   : > { %v787_v5 = vadd.f32 %v786_v24, %v674_v23 }
 0x189   : > { %v676_v25 = vpop.f32.mrf.mxu1  ;;  %v899_v26 = vpop.f32.mrf.mxu3 }
 0x18a   : > { %v900_v32 = vadd.f32 %v899_v26, %v787_v5  ;;  %v677_v34 = vadd.f32 %v676_v25, %v2056_v21 }
 0x18c   : > { %723 = vmatmul.f32.gmra.mxu1 %v430_v28  ;;  %836 = vmatmul.f32.gmra.mxu2 %v431_v31  ;;  %v2163_v31 = vld [vmem:[%s2318_s4] ss:$0 sm:$0xff] }
 0x18d   : > { %1031 = vmatmul.f32.gmra.mxu0 %v900_v32 }
 0x18e   : > { %949 = vmatmul.f32.gmra.mxu3 %v432_v33 }
 0x18f   : > { %v789_v36 = vpop.f32.mrf.mxu2 }
 0x190   : > { %v790_v13 = vadd.f32 %v789_v36, %v677_v34 }
 0x191   : > { %v679_v39 = vpop.f32.mrf.mxu1  ;;  %v902_v40 = vpop.f32.mrf.mxu3 }
 0x192   : > { %v903_v46 = vadd.f32 %v902_v40, %v790_v13  ;;  %v680_v48 = vadd.f32 %v679_v39, %v2065_v29  ;;  %v1098_v13 = vld [vmem:[%s1965_s25] sm:$0xff] }
 0x194   : > { %726 = vmatmul.f32.gmra.mxu1 %v434_v41  ;;  %839 = vmatmul.f32.gmra.mxu2 %v435_v45 }
 0x195   : > { %1034 = vmatmul.f32.gmra.mxu0 %v903_v46 }
 0x196   : > { %952 = vmatmul.f32.gmra.mxu3 %v436_v47 }
 0x197   : > { %v792_v52 = vpop.f32.mrf.mxu2 }
 0x198   : > { %v793_v21 = vadd.f32 %v792_v52, %v680_v48 }
 0x199   : > { %v682_v53 = vpop.f32.mrf.mxu1  ;;  %v905_v54 = vpop.f32.mrf.mxu3 }
 0x19a   : > { %v906_v59 = vadd.f32 %v905_v54, %v793_v21  ;;  %v683_v61 = vadd.f32 %v682_v53, %v2074_v37  ;;  %v1099_v21 = vld [vmem:[%s1965_s25 + $0x8] sm:$0xff] }
 0x19c   : > { %729 = vmatmul.f32.gmra.mxu1 %v438_v55  ;;  %842 = vmatmul.f32.gmra.mxu2 %v439_v58 }
 0x19d   : > { %1037 = vmatmul.f32.gmra.mxu0 %v906_v59 }
 0x19e   : > { %955 = vmatmul.f32.gmra.mxu3 %v440_v60 }
 0x19f   : > { %v795_v63 = vpop.f32.mrf.mxu2 }
 0x1a0   : > { %v796_v29 = vadd.f32 %v795_v63, %v683_v61 }
 0x1a1   : > { %v685_v0 = vpop.f32.mrf.mxu1  ;;  %v908_v1 = vpop.f32.mrf.mxu3 }
 0x1a2   : > { %v909_v7 = vadd.f32 %v908_v1, %v796_v29  ;;  %v686_v9 = vadd.f32 %v685_v0, %v2083_v43  ;;  %v1100_v0 = vld [vmem:[%s1965_s25 + $0x10] sm:$0xff] }
 0x1a4   : > { %732 = vmatmul.f32.gmra.mxu1 %v442_v2  ;;  %845 = vmatmul.f32.gmra.mxu2 %v443_v4 }
 0x1a5   : > { %1040 = vmatmul.f32.gmra.mxu0 %v909_v7 }
 0x1a6   : > { %958 = vmatmul.f32.gmra.mxu3 %v444_v8 }
 0x1a7   : > { %v798_v10 = vpop.f32.mrf.mxu2 }
 0x1a8   : > { %v799_v37 = vadd.f32 %v798_v10, %v686_v9 }
 0x1a9   : > { %v688_v62 = vpop.f32.mrf.mxu1  ;;  %v911_v12 = vpop.f32.mrf.mxu3 }
 0x1aa   : > { %v912_v17 = vadd.f32 %v911_v12, %v799_v37  ;;  %v689_v20 = vadd.f32 %v688_v62, %v2092_v50  ;;  %v1101_v12 = vld [vmem:[%s1965_s25 + $0x18] sm:$0xff] }
 0x1ac   : > { %735 = vmatmul.f32.gmra.mxu1 %v446_v15  ;;  %848 = vmatmul.f32.gmra.mxu2 %v447_v16 }
 0x1ad   : > { %1043 = vmatmul.f32.gmra.mxu0 %v912_v17 }
 0x1ae   : > { %961 = vmatmul.f32.gmra.mxu3 %v448_v18 }
 0x1af   : > { %v801_v23 = vpop.f32.mrf.mxu2 }
 0x1b0   : > { %v802_v24 = vadd.f32 %v801_v23, %v689_v20 }
 0x1b1   : > { %v691_v5 = vpop.f32.mrf.mxu1  ;;  %v914_v43 = vpop.f32.mrf.mxu3 }
 0x1b2   : > { %v915_v25 = vadd.f32 %v914_v43, %v802_v24  ;;  %v692_v26 = vadd.f32 %v691_v5, %v2036_v3 }
 0x1b5   : > { %1046 = vmatmul.f32.gmra.mxu0 %v915_v25  ;;  %v1102_v25 = vld [vmem:[%s1965_s25 + $0x20] sm:$0xff] }
 0x1b7   : > { %v804_v28 = vpop.f32.mrf.mxu2 }
 0x1b8   : > { %v805_v32 = vadd.f32 %v804_v28, %v692_v26 }
 0x1b9   : > { %v694_v33 = vpop.f32.mrf.mxu1  ;;  %v917_v50 = vpop.f32.mrf.mxu3 }
 0x1ba   : > { %v918_v34 = vadd.f32 %v917_v50, %v805_v32  ;;  %v1002_v36 = vpop.f32.mrf.mxu0  ;;  %v695_v3 = vadd.f32 %v694_v33, %v2045_v11 }
 0x1bb   : > { %v1003_v39 = vadd.f32 %v2163_v31, %v1002_v36 }
 0x1bd   : > { %v1130_v40 = vadd.f32 %v1098_v13, %v1003_v39  ;;  %1049 = vmatmul.f32.gmra.mxu0 %v918_v34 }
 0x1bf   : > { %1508 = vtanh.f32 %v1130_v40  ;;  %v807_v41 = vpop.f32.mrf.mxu2  ;;  %v1103_v40 = vld [vmem:[%s1965_s25 + $0x28] sm:$0xff] }
 0x1c0   : > { %v808_v45 = vadd.f32 %v807_v41, %v695_v3 }
 0x1c1   : > { %v697_v46 = vpop.f32.mrf.mxu1  ;;  %v920_v47 = vpop.f32.mrf.mxu3 }
 0x1c2   : > { %v921_v48 = vadd.f32 %v920_v47, %v808_v45  ;;  %v1005_v52 = vpop.f32.mrf.mxu0  ;;  %v698_v11 = vadd.f32 %v697_v46, %v2054_v19 }
 0x1c3   : > { %v1006_v53 = vadd.f32 %v2163_v31, %v1005_v52 }
 0x1c5   : > { %v1509_v54 = vpop.eup %1508  ;;  %v1131_v55 = vadd.f32 %v1099_v21, %v1006_v53  ;;  %1052 = vmatmul.f32.gmra.mxu0 %v921_v48 }
 0x1c6   : > { %1194 = vst [vmem:[%s2172_s10] sm:$0xff] %v1509_v54  ;;  %v1104_v54 = vld [vmem:[%s1965_s25 + $0x30] sm:$0xff] }
 0x1c7   : > { %1510 = vtanh.f32 %v1131_v55  ;;  %v810_v58 = vpop.f32.mrf.mxu2 }
 0x1c8   : > { %v811_v59 = vadd.f32 %v810_v58, %v698_v11 }
 0x1c9   : > { %v700_v60 = vpop.f32.mrf.mxu1  ;;  %v923_v61 = vpop.f32.mrf.mxu3 }
 0x1ca   : > { %v924_v63 = vadd.f32 %v923_v61, %v811_v59  ;;  %v1008_v29 = vpop.f32.mrf.mxu0  ;;  %v701_v7 = vadd.f32 %v700_v60, %v2063_v27 }
 0x1cb   : > { %v1009_v1 = vadd.f32 %v2163_v31, %v1008_v29 }
 0x1cd   : > { %v1511_v2 = vpop.eup %1510  ;;  %v1132_v4 = vadd.f32 %v1100_v0, %v1009_v1  ;;  %1055 = vmatmul.f32.gmra.mxu0 %v924_v63  ;;  %v1105_v1 = vld [vmem:[%s1965_s25 + $0x38] sm:$0xff] }
 0x1ce   : > { %1195 = vst [vmem:[%s2172_s10 + $0x8] sm:$0xff] %v1511_v2 }
 0x1cf   : > { %1512 = vtanh.f32 %v1132_v4  ;;  %v813_v19 = vpop.f32.mrf.mxu2 }
 0x1d0   : > { %v814_v8 = vadd.f32 %v813_v19, %v701_v7 }
 0x1d1   : > { %v703_v9 = vpop.f32.mrf.mxu1  ;;  %v926_v10 = vpop.f32.mrf.mxu3 }
 0x1d2   : > { %v927_v37 = vadd.f32 %v926_v10, %v814_v8  ;;  %v1011_v62 = vpop.f32.mrf.mxu0  ;;  %v704_v18 = vadd.f32 %v703_v9, %v2072_v35 }
 0x1d3   : > { %v1012_v15 = vadd.f32 %v2163_v31, %v1011_v62 }
 0x1d5   : > { %v1513_v16 = vpop.eup %1512  ;;  %v1133_v17 = vadd.f32 %v1101_v12, %v1012_v15  ;;  %1058 = vmatmul.f32.gmra.mxu0 %v927_v37  ;;  %v1106_v12 = vld [vmem:[%s1965_s25 + $0x40] sm:$0xff] }
 0x1d6   : > { %1196 = vst [vmem:[%s2172_s10 + $0x10] sm:$0xff] %v1513_v16 }
 0x1d7   : > { %1514 = vtanh.f32 %v1133_v17  ;;  %v816_v27 = vpop.f32.mrf.mxu2 }
 0x1d8   : > { %v817_v20 = vadd.f32 %v816_v27, %v704_v18 }
 0x1d9   : > { %v706_v23 = vpop.f32.mrf.mxu1  ;;  %v929_v24 = vpop.f32.mrf.mxu3 }
 0x1da   : > { %v930_v5 = vadd.f32 %v929_v24, %v817_v20  ;;  %v1014_v43 = vpop.f32.mrf.mxu0  ;;  %v707_v33 = vadd.f32 %v706_v23, %v2081_v42 }
 0x1db   : > { %v1015_v26 = vadd.f32 %v2163_v31, %v1014_v43  ;;  %v1107_v43 = vld [vmem:[%s1965_s25 + $0x48] sm:$0xff] }
 0x1dd   : > { %v1515_v28 = vpop.eup %1514  ;;  %v1134_v32 = vadd.f32 %v1102_v25, %v1015_v26  ;;  %1061 = vmatmul.f32.gmra.mxu0 %v930_v5 }
 0x1de   : > { %1197 = vst [vmem:[%s2172_s10 + $0x18] sm:$0xff] %v1515_v28 }
 0x1df   : > { %1516 = vtanh.f32 %v1134_v32  ;;  %v819_v35 = vpop.f32.mrf.mxu2 }
 0x1e0   : > { %v820_v50 = vadd.f32 %v819_v35, %v707_v33 }
 0x1e1   : > { %v709_v34 = vpop.f32.mrf.mxu1  ;;  %v932_v36 = vpop.f32.mrf.mxu3 }
 0x1e2   : > { %v933_v13 = vadd.f32 %v932_v36, %v820_v50  ;;  %v1017_v39 = vpop.f32.mrf.mxu0  ;;  %v710_v46 = vadd.f32 %v709_v34, %v2090_v49 }
 0x1e3   : > { %v1018_v3 = vadd.f32 %v2163_v31, %v1017_v39 }
 0x1e5   : > { %v1517_v41 = vpop.eup %1516  ;;  %v1135_v45 = vadd.f32 %v1103_v40, %v1018_v3  ;;  %1064 = vmatmul.f32.gmra.mxu0 %v933_v13  ;;  %v1108_v13 = vld [vmem:[%s1965_s25 + $0x50] sm:$0xff] }
 0x1e6   : > { %1198 = vst [vmem:[%s2172_s10 + $0x20] sm:$0xff] %v1517_v41 }
 0x1e7   : > { %1518 = vtanh.f32 %v1135_v45  ;;  %v822_v42 = vpop.f32.mrf.mxu2 }
 0x1e8   : > { %v823_v47 = vadd.f32 %v822_v42, %v710_v46 }
 0x1e9   : > { %v712_v48 = vpop.f32.mrf.mxu1  ;;  %v935_v52 = vpop.f32.mrf.mxu3 }
 0x1ea   : > { %v936_v21 = vadd.f32 %v935_v52, %v823_v47  ;;  %v1020_v53 = vpop.f32.mrf.mxu0  ;;  %v713_v59 = vadd.f32 %v712_v48, %v2099_v56  ;;  %v1109_v52 = vld [vmem:[%s1965_s25 + $0x58] sm:$0xff] }
 0x1eb   : > { %v1021_v55 = vadd.f32 %v2163_v31, %v1020_v53 }
 0x1ed   : > { %v1519_v11 = vpop.eup %1518  ;;  %v1136_v58 = vadd.f32 %v1104_v54, %v1021_v55  ;;  %1067 = vmatmul.f32.gmra.mxu0 %v936_v21 }
 0x1ee   : > { %1199 = vst [vmem:[%s2172_s10 + $0x28] sm:$0xff] %v1519_v11 }
 0x1ef   : > { %1520 = vtanh.f32 %v1136_v58  ;;  %v825_v49 = vpop.f32.mrf.mxu2 }
 0x1f0   : > { %v826_v60 = vadd.f32 %v825_v49, %v713_v59 }
 0x1f1   : > { %v715_v61 = vpop.f32.mrf.mxu1  ;;  %v938_v63 = vpop.f32.mrf.mxu3 }
 0x1f2   : > { %v939_v29 = vadd.f32 %v938_v63, %v826_v60  ;;  %v1023_v0 = vpop.f32.mrf.mxu0  ;;  %v716_v19 = vadd.f32 %v715_v61, %v2040_v6  ;;  %v1110_v61 = vld [vmem:[%s1965_s25 + $0x60] sm:$0xff] }
 0x1f3   : > { %v1024_v2 = vadd.f32 %v2163_v31, %v1023_v0 }
 0x1f5   : > { %v1521_v4 = vpop.eup %1520  ;;  %v1137_v7 = vadd.f32 %v1105_v1, %v1024_v2  ;;  %1070 = vmatmul.f32.gmra.mxu0 %v939_v29 }
 0x1f6   : > { %1200 = vst [vmem:[%s2172_s10 + $0x30] sm:$0xff] %v1521_v4 }
 0x1f7   : > { %1522 = vtanh.f32 %v1137_v7  ;;  %v828_v56 = vpop.f32.mrf.mxu2 }
 0x1f8   : > { %v829_v8 = vadd.f32 %v828_v56, %v716_v19 }
 0x1f9   : > { %v718_v9 = vpop.f32.mrf.mxu1  ;;  %v941_v10 = vpop.f32.mrf.mxu3 }
 0x1fa   : > { %v942_v37 = vadd.f32 %v941_v10, %v829_v8  ;;  %v1026_v62 = vpop.f32.mrf.mxu0  ;;  %v719_v18 = vadd.f32 %v718_v9, %v2049_v14  ;;  %v1111_v8 = vld [vmem:[%s1965_s25 + $0x68] sm:$0xff] }
 0x1fb   : > { %v1027_v15 = vadd.f32 %v2163_v31, %v1026_v62 }
 0x1fd   : > { %v1523_v16 = vpop.eup %1522  ;;  %v1138_v17 = vadd.f32 %v1106_v12, %v1027_v15  ;;  %1073 = vmatmul.f32.gmra.mxu0 %v942_v37 }
 0x1fe   : > { %1201 = vst [vmem:[%s2172_s10 + $0x38] sm:$0xff] %v1523_v16 }
 0x1ff   : > { %1524 = vtanh.f32 %v1138_v17  ;;  %v831_v6 = vpop.f32.mrf.mxu2 }
 0x200   : > { %v832_v27 = vadd.f32 %v831_v6, %v719_v18  ;;  %v1112_v18 = vld [vmem:[%s1965_s25 + $0x70] sm:$0xff] }
 0x201   : > { %v721_v20 = vpop.f32.mrf.mxu1  ;;  %v944_v23 = vpop.f32.mrf.mxu3 }
 0x202   : > { %v945_v24 = vadd.f32 %v944_v23, %v832_v27  ;;  %v1029_v5 = vpop.f32.mrf.mxu0  ;;  %v722_v32 = vadd.f32 %v721_v20, %v2058_v22 }
 0x203   : > { %v1030_v25 = vadd.f32 %v2163_v31, %v1029_v5 }
 0x205   : > { %v1525_v26 = vpop.eup %1524  ;;  %v1139_v28 = vadd.f32 %v1107_v43, %v1030_v25  ;;  %1076 = vmatmul.f32.gmra.mxu0 %v945_v24 }
 0x206   : > { %1202 = vst [vmem:[%s2172_s10 + $0x40] sm:$0xff] %v1525_v26 }
 0x207   : > { %1526 = vtanh.f32 %v1139_v28  ;;  %v834_v14 = vpop.f32.mrf.mxu2  ;;  %v1113_v28 = vld [vmem:[%s1965_s25 + $0x78] sm:$0xff] }
 0x208   : > { %v835_v33 = vadd.f32 %v834_v14, %v722_v32 }
 0x209   : > { %v724_v35 = vpop.f32.mrf.mxu1  ;;  %v947_v50 = vpop.f32.mrf.mxu3 }
 0x20a   : > { %v948_v34 = vadd.f32 %v947_v50, %v835_v33  ;;  %v1032_v36 = vpop.f32.mrf.mxu0  ;;  %v725_v41 = vadd.f32 %v724_v35, %v2067_v30 }
 0x20b   : > { %v1033_v39 = vadd.f32 %v2163_v31, %v1032_v36 }
 0x20d   : > { %v1527_v40 = vpop.eup %1526  ;;  %v1140_v3 = vadd.f32 %v1108_v13, %v1033_v39  ;;  %1079 = vmatmul.f32.gmra.mxu0 %v948_v34  ;;  %v1115_v39 = vld [vmem:[%s1965_s25 + $0x88] sm:$0xff] }
 0x20e   : > { %1203 = vst [vmem:[%s2172_s10 + $0x48] sm:$0xff] %v1527_v40 }
 0x20f   : > { %1528 = vtanh.f32 %v1140_v3  ;;  %v837_v22 = vpop.f32.mrf.mxu2 }
 0x210   : > { %v838_v45 = vadd.f32 %v837_v22, %v725_v41 }
 0x211   : > { %v727_v46 = vpop.f32.mrf.mxu1  ;;  %v950_v42 = vpop.f32.mrf.mxu3 }
 0x212   : > { %v951_v47 = vadd.f32 %v950_v42, %v838_v45  ;;  %v1035_v48 = vpop.f32.mrf.mxu0  ;;  %v728_v55 = vadd.f32 %v727_v46, %v2076_v38  ;;  %v1116_v45 = vld [vmem:[%s1965_s25 + $0x90] sm:$0xff] }
 0x213   : > { %v1036_v21 = vadd.f32 %v2163_v31, %v1035_v48 }
 0x215   : > { %v1529_v53 = vpop.eup %1528  ;;  %v1141_v54 = vadd.f32 %v1109_v52, %v1036_v21  ;;  %1082 = vmatmul.f32.gmra.mxu0 %v951_v47  ;;  %v1117_v52 = vld [vmem:[%s1965_s25 + $0x98] sm:$0xff] }
 0x216   : > { %1204 = vst [vmem:[%s2172_s10 + $0x50] sm:$0xff] %v1529_v53 }
 0x217   : > { %1530 = vtanh.f32 %v1141_v54  ;;  %v840_v30 = vpop.f32.mrf.mxu2 }
 0x218   : > { %v841_v11 = vadd.f32 %v840_v30, %v728_v55  ;;  %v1118_v30 = vld [vmem:[%s1965_s25 + $0xa0] sm:$0xff] }
 0x219   : > { %v730_v58 = vpop.f32.mrf.mxu1  ;;  %v953_v59 = vpop.f32.mrf.mxu3 }
 0x21a   : > { %v954_v49 = vadd.f32 %v953_v59, %v841_v11  ;;  %v1038_v60 = vpop.f32.mrf.mxu0  ;;  %v731_v1 = vadd.f32 %v730_v58, %v2085_v44 }
 0x21b   : > { %v1039_v63 = vadd.f32 %v2163_v31, %v1038_v60  ;;  %v1119_v60 = vld [vmem:[%s1965_s25 + $0xa8] sm:$0xff] }
 0x21d   : > { %v1531_v29 = vpop.eup %1530  ;;  %v1142_v0 = vadd.f32 %v1110_v61, %v1039_v63  ;;  %1085 = vmatmul.f32.gmra.mxu0 %v954_v49 }
 0x21e   : > { %1205 = vst [vmem:[%s2172_s10 + $0x58] sm:$0xff] %v1531_v29 }
 0x21f   : > { %1532 = vtanh.f32 %v1142_v0  ;;  %v843_v38 = vpop.f32.mrf.mxu2 }
 0x220   : > { %v844_v2 = vadd.f32 %v843_v38, %v731_v1  ;;  %v1120_v1 = vld [vmem:[%s1965_s25 + $0xb0] sm:$0xff] }
 0x221   : > { %v733_v4 = vpop.f32.mrf.mxu1  ;;  %v956_v7 = vpop.f32.mrf.mxu3 }
 0x222   : > { %v957_v19 = vadd.f32 %v956_v7, %v844_v2  ;;  %v1041_v56 = vpop.f32.mrf.mxu0  ;;  %v734_v62 = vadd.f32 %v733_v4, %v2094_v51 }
 0x223   : > { %v1042_v9 = vadd.f32 %v2163_v31, %v1041_v56 }
 0x225   : > { %v1533_v10 = vpop.eup %1532  ;;  %v1143_v37 = vadd.f32 %v1111_v8, %v1042_v9  ;;  %1088 = vmatmul.f32.gmra.mxu0 %v957_v19  ;;  %v1121_v19 = vld [vmem:[%s1965_s25 + $0xb8] sm:$0xff] }
 0x226   : > { %1206 = vst [vmem:[%s2172_s10 + $0x60] sm:$0xff] %v1533_v10 }
 0x227   : > { %1534 = vtanh.f32 %v1143_v37  ;;  %v846_v44 = vpop.f32.mrf.mxu2  ;;  %v1122_v37 = vld [vmem:[%s1965_s25 + $0xc0] sm:$0xff] }
 0x228   : > { %v847_v12 = vadd.f32 %v846_v44, %v734_v62 }
 0x229   : > { %v959_v15 = vpop.f32.mrf.mxu3  ;;  %v736_v6 = vpop.f32.mrf.mxu1 }
 0x22a   : > { %v960_v16 = vadd.f32 %v959_v15, %v847_v12  ;;  %v1044_v17 = vpop.f32.mrf.mxu0  ;;  %v737_v24 = vadd.f32 %v736_v6, %v2101_v57  ;;  %v1114_v57 = vld [vmem:[%s1965_s25 + $0x80] sm:$0xff] }
 0x22b   : > { %v1045_v27 = vadd.f32 %v2163_v31, %v1044_v17 }
 0x22d   : > { %v1535_v20 = vpop.eup %1534  ;;  %v1144_v23 = vadd.f32 %v1112_v18, %v1045_v27  ;;  %1091 = vmatmul.f32.gmra.mxu0 %v960_v16  ;;  %v1123_v16 = vld [vmem:[%s1965_s25 + $0xc8] sm:$0xff] }
 0x22e   : > { %1207 = vst [vmem:[%s2172_s10 + $0x68] sm:$0xff] %v1535_v20  ;;  %v1124_v20 = vld [vmem:[%s1965_s25 + $0xd0] sm:$0xff] }
 0x22f   : > { %1536 = vtanh.f32 %v1144_v23  ;;  %v849_v51 = vpop.f32.mrf.mxu2 }
 0x230   : > { %v850_v5 = vadd.f32 %v849_v51, %v737_v24 }
 0x231   : > { %v962_v43 = vpop.f32.mrf.mxu3 }
 0x232   : > { %v963_v25 = vadd.f32 %v962_v43, %v850_v5  ;;  %v1047_v26 = vpop.f32.mrf.mxu0  ;;  %v1125_v43 = vld [vmem:[%s1965_s25 + $0xd8] sm:$0xff] }
 0x233   : > { %v1048_v32 = vadd.f32 %v2163_v31, %v1047_v26 }
 0x235   : > { %v1537_v14 = vpop.eup %1536  ;;  %v1145_v33 = vadd.f32 %v1113_v28, %v1048_v32  ;;  %1094 = vmatmul.f32.gmra.mxu0 %v963_v25 }
 0x236   : > { %1208 = vst [vmem:[%s2172_s10 + $0x70] sm:$0xff] %v1537_v14  ;;  %v1126_v14 = vld [vmem:[%s1965_s25 + $0xe0] sm:$0xff] }
 0x237   : > { %1538 = vtanh.f32 %v1145_v33 }
 0x23a   : > { %v1050_v35 = vpop.f32.mrf.mxu0 }
 0x23b   : > { %v1051_v50 = vadd.f32 %v2163_v31, %v1050_v35 }
 0x23d   : > { %v1539_v34 = vpop.eup %1538  ;;  %v1146_v36 = vadd.f32 %v1114_v57, %v1051_v50 }
 0x23e   : > { %1209 = vst [vmem:[%s2172_s10 + $0x78] sm:$0xff] %v1539_v34  ;;  %v1127_v34 = vld [vmem:[%s1965_s25 + $0xe8] sm:$0xff] }
 0x23f   : > { %1540 = vtanh.f32 %v1146_v36 }
 0x242   : > { %v1053_v13 = vpop.f32.mrf.mxu0 }
 0x243   : > { %v1054_v40 = vadd.f32 %v2163_v31, %v1053_v13 }
 0x245   : > { %v1541_v3 = vpop.eup %1540  ;;  %v1147_v41 = vadd.f32 %v1115_v39, %v1054_v40 }
 0x246   : > { %1210 = vst [vmem:[%s2172_s10 + $0x80] sm:$0xff] %v1541_v3  ;;  %v1128_v3 = vld [vmem:[%s1965_s25 + $0xf0] sm:$0xff] }
 0x247   : > { %1542 = vtanh.f32 %v1147_v41 }
 0x24a   : > { %v1056_v22 = vpop.f32.mrf.mxu0 }
 0x24b   : > { %v1057_v46 = vadd.f32 %v2163_v31, %v1056_v22 }
 0x24d   : > { %v1543_v42 = vpop.eup %1542  ;;  %v1148_v47 = vadd.f32 %v1116_v45, %v1057_v46 }
 0x24e   : > { %1211 = vst [vmem:[%s2172_s10 + $0x88] sm:$0xff] %v1543_v42  ;;  %v1129_v42 = vld [vmem:[%s1965_s25 + $0xf8] sm:$0xff] }
 0x24f   : > { %1544 = vtanh.f32 %v1148_v47 }
 0x252   : > { %v1059_v48 = vpop.f32.mrf.mxu0 }
 0x253   : > { %v1060_v21 = vadd.f32 %v2163_v31, %v1059_v48 }
 0x255   : > { %v1545_v53 = vpop.eup %1544  ;;  %v1149_v54 = vadd.f32 %v1117_v52, %v1060_v21 }
 0x256   : > { %1212 = vst [vmem:[%s2172_s10 + $0x90] sm:$0xff] %v1545_v53 }
 0x257   : > { %1546 = vtanh.f32 %v1149_v54 }
 0x25a   : > { %v1062_v55 = vpop.f32.mrf.mxu0 }
 0x25b   : > { %v1063_v11 = vadd.f32 %v2163_v31, %v1062_v55 }
 0x25d   : > { %v1547_v58 = vpop.eup %1546  ;;  %v1150_v59 = vadd.f32 %v1118_v30, %v1063_v11 }
 0x25e   : > { %1213 = vst [vmem:[%s2172_s10 + $0x98] sm:$0xff] %v1547_v58 }
 0x25f   : > { %1548 = vtanh.f32 %v1150_v59 }
 0x262   : > { %v1065_v49 = vpop.f32.mrf.mxu0 }
 0x263   : > { %v1066_v61 = vadd.f32 %v2163_v31, %v1065_v49 }
 0x265   : > { %v1549_v63 = vpop.eup %1548  ;;  %v1151_v29 = vadd.f32 %v1119_v60, %v1066_v61 }
 0x266   : > { %1214 = vst [vmem:[%s2172_s10 + $0xa0] sm:$0xff] %v1549_v63 }
 0x267   : > { %1550 = vtanh.f32 %v1151_v29 }
 0x26a   : > { %v1068_v0 = vpop.f32.mrf.mxu0 }
 0x26b   : > { %v1069_v38 = vadd.f32 %v2163_v31, %v1068_v0 }
 0x26d   : > { %v1551_v2 = vpop.eup %1550  ;;  %v1152_v4 = vadd.f32 %v1120_v1, %v1069_v38 }
 0x26e   : > { %1215 = vst [vmem:[%s2172_s10 + $0xa8] sm:$0xff] %v1551_v2 }
 0x26f   : > { %1552 = vtanh.f32 %v1152_v4 }
 0x272   : > { %v1071_v7 = vpop.f32.mrf.mxu0 }
 0x273   : > { %v1072_v56 = vadd.f32 %v2163_v31, %v1071_v7 }
 0x275   : > { %v1553_v8 = vpop.eup %1552  ;;  %v1153_v9 = vadd.f32 %v1121_v19, %v1072_v56 }
 0x276   : > { %1216 = vst [vmem:[%s2172_s10 + $0xb0] sm:$0xff] %v1553_v8 }
 0x277   : > { %1554 = vtanh.f32 %v1153_v9 }
 0x27a   : > { %v1074_v10 = vpop.f32.mrf.mxu0 }
 0x27b   : > { %v1075_v62 = vadd.f32 %v2163_v31, %v1074_v10 }
 0x27d   : > { %v1555_v44 = vpop.eup %1554  ;;  %v1154_v12 = vadd.f32 %v1122_v37, %v1075_v62 }
 0x27e   : > { %1217 = vst [vmem:[%s2172_s10 + $0xb8] sm:$0xff] %v1555_v44 }
 0x27f   : > { %1556 = vtanh.f32 %v1154_v12 }
 0x282   : > { %v1077_v15 = vpop.f32.mrf.mxu0 }
 0x283   : > { %v1078_v17 = vadd.f32 %v2163_v31, %v1077_v15 }
 0x285   : > { %v1557_v18 = vpop.eup %1556  ;;  %v1155_v6 = vadd.f32 %v1123_v16, %v1078_v17 }
 0x286   : > { %1218 = vst [vmem:[%s2172_s10 + $0xc0] sm:$0xff] %v1557_v18 }
 0x287   : > { %1558 = vtanh.f32 %v1155_v6 }
 0x28a   : > { %v1080_v27 = vpop.f32.mrf.mxu0 }
 0x28b   : > { %v1081_v23 = vadd.f32 %v2163_v31, %v1080_v27 }
 0x28d   : > { %v1559_v24 = vpop.eup %1558  ;;  %v1156_v51 = vadd.f32 %v1124_v20, %v1081_v23 }
 0x28e   : > { %1219 = vst [vmem:[%s2172_s10 + $0xc8] sm:$0xff] %v1559_v24 }
 0x28f   : > { %1560 = vtanh.f32 %v1156_v51 }
 0x292   : > { %v1083_v5 = vpop.f32.mrf.mxu0 }
 0x293   : > { %v1084_v25 = vadd.f32 %v2163_v31, %v1083_v5 }
 0x295   : > { %v1561_v26 = vpop.eup %1560  ;;  %v1157_v28 = vadd.f32 %v1125_v43, %v1084_v25 }
 0x296   : > { %1220 = vst [vmem:[%s2172_s10 + $0xd0] sm:$0xff] %v1561_v26 }
 0x297   : > { %1562 = vtanh.f32 %v1157_v28 }
 0x29a   : > { %v1086_v32 = vpop.f32.mrf.mxu0 }
 0x29b   : > { %v1087_v33 = vadd.f32 %v2163_v31, %v1086_v32 }
 0x29d   : > { %v1563_v35 = vpop.eup %1562  ;;  %v1158_v57 = vadd.f32 %v1126_v14, %v1087_v33 }
 0x29e   : > { %1221 = vst [vmem:[%s2172_s10 + $0xd8] sm:$0xff] %v1563_v35 }
 0x29f   : > { %1564 = vtanh.f32 %v1158_v57 }
 0x2a2   : > { %v1089_v50 = vpop.f32.mrf.mxu0 }
 0x2a3   : > { %v1090_v36 = vadd.f32 %v2163_v31, %v1089_v50 }
 0x2a5   : > { %v1565_v13 = vpop.eup %1564  ;;  %v1159_v39 = vadd.f32 %v1127_v34, %v1090_v36 }
 0x2a6   : > { %1222 = vst [vmem:[%s2172_s10 + $0xe0] sm:$0xff] %v1565_v13 }
 0x2a7   : > { %1566 = vtanh.f32 %v1159_v39 }
 0x2aa   : > { %v1092_v40 = vpop.f32.mrf.mxu0 }
 0x2ab   : > { %v1093_v41 = vadd.f32 %v2163_v31, %v1092_v40 }
 0x2ad   : > { %v1567_v22 = vpop.eup %1566  ;;  %v1160_v45 = vadd.f32 %v1128_v3, %v1093_v41 }
 0x2ae   : > { %1223 = vst [vmem:[%s2172_s10 + $0xe8] sm:$0xff] %v1567_v22 }
 0x2af   : > { %1568 = vtanh.f32 %v1160_v45 }
 0x2b2   : > { %v1095_v46 = vpop.f32.mrf.mxu0 }
 0x2b3   : > { %v1096_v47 = vadd.f32 %v2163_v31, %v1095_v46 }
 0x2b5   : > { %v1569_v48 = vpop.eup %1568  ;;  %v1161_v52 = vadd.f32 %v1129_v42, %v1096_v47 }
 0x2b6   : > { %1224 = vst [vmem:[%s2172_s10 + $0xf0] sm:$0xff] %v1569_v48 }
 0x2b7   : > { %1570 = vtanh.f32 %v1161_v52 }
 0x2bd   : > { %v1571_v21 = vpop.eup %1570 }
 0x2be   : > { %1225 = vst [vmem:[%s2172_s10 + $0xf8] sm:$0xff] %v1571_v21 }
 0x2bf   : > { %1719 = shalt.err (!%p1716_p10)
}
 0x2c0   : > { %s1778_s16 = smov 128   ;;  %s1779_s30 = smov 8  }
 0x2c1   : > { %1441 = dma.vmem_to_hbm [thread:$0]  (%p1886_p7), %s1240_s28, 4096, %s1242_s6, %s1227_s20, %s1778_s16, %s1778_s16, %s1779_s30  }
 0x2c2 PF: > { %s2351_s17 = sld [smem:[#allocation15_spill]]  ;;  %p2353_p3 = scmp.ge.s32.totalorder %s1770_s21, 2 }
 0x2c4   : > { %p1458_p9 = pnand %p2353_p3, %p1845_p6 }
 0x2c6   : > { %p1459_p8 = pneg %p1458_p9 }
 0x2c8   : > { %s1256_s1 = sand.u32 1, %s2351_s17  }
 0x2c9   : > { %s1257_s18 = scalar_lea.sflag [#allocation4], %s1256_s1 }
 0x2ca   : > { %1753 = dma.done.wait (%p1459_p8), %s1257_s18, 4096  }
 0x2cb   : > { %1755 = vsyncadd (%p1459_p8), %s1257_s18, 4294963200  ;;  %s2354_s21 = sld [smem:[#allocation18_spill]]  ;;  %s2357_s18 = smov %s1762_s19 }
 0x2cc   : > { %s2355_s25 = sld [smem:[#allocation16_spill]] }
 0x2cd   : > { %s2356_s20 = sld [smem:[#allocation19_spill]] }
 0x2d1   : > { %p19_p12 = scmp.ge.s32.totalorder %s2354_s21, 4  }
 0x2d2   : > { %s2358_s19 = smov %s2355_s25 }
 0x2d3   :  { %21 = sbr.rel (!%p19_p12) target bundleno = 9 (0x9), region = 104 }
 0x2d8   :  { %1263 = vsyncpa [#allocation3], 1 }
 0x2d9   :  { %1265 = vsyncpa [#allocation3 + $0x1], 1 }
 0x2da   :  { %1266 = vsyncpa [#allocation6], 1 }
 0x2db   :  { %1267 = vsyncpa [#allocation4], 1 }
 0x2dc   :  { %1269 = vsyncpa [#allocation4 + $0x1], 1 }

</bundles_post_ra>
